<compile_context>
chip_gen: v7x
topology: tpu7x:2x2x1
jax: 0.10.0
libtpu: 0.0.40
codegen_flags: <defaults>
</compile_context>

<pallas_src>
import functools
import math

import jax
import jax.numpy as jnp
from jax.experimental import pallas as pl
from jax.experimental.pallas import tpu as pltpu

# ----------------------------- small model config -----------------------------
VOCAB = 100
MAX_POS = 32
HIDDEN = 32
NUM_HEADS = 4
HEAD_DIM = HIDDEN // NUM_HEADS
INTERMEDIATE = 64
NUM_LAYERS = 2
NUM_LABELS = 3
PAD_ID = 1
LN_EPS = 1e-5
CLS_PAD = 128          # lane-dense padding for the classifier output

B = 2
S = 8

# ---------------- packed per-layer parameter layout: (L, LW_ROWS, LW_COLS) ----------------
R_QW, R_KW, R_VW, R_OW = 0, 32, 64, 96          # (H, H) weights, lanes 0:H
R_W1, R_W2 = 128, 160                            # w1 (H, I) lanes 0:I ; w2 (I, H) lanes 0:H
R_VEC = 224                                      # one (1, width) vector per row below
LW_ROWS, LW_COLS = 240, 64
V_QB, V_KB, V_VB, V_OB = 0, 1, 2, 3
V_LN1G, V_LN1B = 4, 5
V_B1, V_B2 = 6, 7
V_LN2G, V_LN2B = 8, 9

# ---------------- packed globals layout: (G_ROWS, CLS_PAD) ----------------
G_EMBLN_G, G_EMBLN_B, G_CLSB = 0, 1, 2
G_CLSW = 8
G_ROWS = G_CLSW + HIDDEN


def _vmem_spec():
    return pl.BlockSpec(memory_space=pltpu.MemorySpace.VMEM)


# ------------------------- fused encoder + classifier kernel -------------------------
def _fused_encoder_kernel(emb_ref, bias_ref, lw_ref, glob_ref, logits_ref, *, batch, seq):
    """Whole Camembert encoder + classifier head in one kernel.

    emb_ref:   (T, H)        summed embeddings (word + pos + type), T = batch*seq
    bias_ref:  (NH*T, T)     additive attention bias: block-diag over batch + key padding
    lw_ref:    (L, 240, 64)  packed per-layer weights / biases / LN params
    glob_ref:  (40, 128)     packed emb-LN params + classifier weight/bias (lane-padded)
    logits_ref:(batch, 128)  lane-dense classifier output for the CLS token of each sequence
    """
    T = batch * seq

    def ln(x, g, b):
        # two-moment form: both cross-lane reductions are independent (issue back-to-back)
        mu = jnp.mean(x, axis=-1, keepdims=True)
        msq = jnp.mean(x * x, axis=-1, keepdims=True)
        var = msq - mu * mu
        return (x - mu) * jax.lax.rsqrt(var + LN_EPS) * g + b

    def gelu(x):
        # TODO(synk): HF Camembert uses erf-based GELU; tanh approximation used here (~1e-3 drift).
        c = math.sqrt(2.0 / math.pi)
        return 0.5 * x * (1.0 + jnp.tanh(c * (x + 0.044715 * x * x * x)))

    # ---- unpack globals (static, lane-offset-0 slices) ----
    emb_ln_g = glob_ref[G_EMBLN_G:G_EMBLN_G + 1, 0:HIDDEN]          # (1, H)
    emb_ln_b = glob_ref[G_EMBLN_B:G_EMBLN_B + 1, 0:HIDDEN]          # (1, H)
    cls_b = glob_ref[G_CLSB:G_CLSB + 1, :]                          # (1, 128)
    cls_w = glob_ref[G_CLSW:G_CLSW + HIDDEN, :]                     # (H, 128)

    # embeddings -> LayerNorm
    x = ln(emb_ref[...], emb_ln_g, emb_ln_b)

    # additive attention bias, hoisted once (block-diag batch mask + key padding, prebuilt in JAX)
    bias = bias_ref[...]                                            # (NH*T, T)

    # per-head (1, H) lane masks; 1/sqrt(head_dim) folded into the Q-side mask
    lane = jax.lax.broadcasted_iota(jnp.int32, (1, HIDDEN), 1)
    scale = 1.0 / math.sqrt(HEAD_DIM)
    in_head = [(lane >= h * HEAD_DIM) & (lane < (h + 1) * HEAD_DIM) for h in range(NUM_HEADS)]
    hq_mask = [jnp.where(m, scale, 0.0) for m in in_head]           # Q-side (scaled)
    hv_mask = [jnp.where(m, 1.0, 0.0) for m in in_head]             # context-fold mask

    for li in range(NUM_LAYERS):
        # ---- unpack per-layer params (all static slices, lane offset 0) ----
        qw = lw_ref[li, R_QW:R_QW + HIDDEN, 0:HIDDEN]
        kw = lw_ref[li, R_KW:R_KW + HIDDEN, 0:HIDDEN]
        vw = lw_ref[li, R_VW:R_VW + HIDDEN, 0:HIDDEN]
        ow = lw_ref[li, R_OW:R_OW + HIDDEN, 0:HIDDEN]
        w1 = lw_ref[li, R_W1:R_W1 + HIDDEN, 0:INTERMEDIATE]
        w2 = lw_ref[li, R_W2:R_W2 + INTERMEDIATE, 0:HIDDEN]

        def vec(r, width=HIDDEN):
            return lw_ref[li, R_VEC + r:R_VEC + r + 1, 0:width]     # (1, width)

        qb, kb, vb, ob = vec(V_QB), vec(V_KB), vec(V_VB), vec(V_OB)
        ln1g, ln1b = vec(V_LN1G), vec(V_LN1B)
        b1, b2 = vec(V_B1, INTERMEDIATE), vec(V_B2)
        ln2g, ln2b = vec(V_LN2G), vec(V_LN2B)

        # ---- Q/K/V projections: three aligned (H, H) matmuls (no sub-128 lane slicing) ----
        q = jnp.dot(x, qw, preferred_element_type=jnp.float32) + qb       # (T, H)
        k = jnp.dot(x, kw, preferred_element_type=jnp.float32) + kb       # (T, H)
        v = jnp.dot(x, vw, preferred_element_type=jnp.float32) + vb       # (T, H)

        # ---- attention: one score matmul + one softmax for all batches & heads ----
        # stacked head-scaled queries along sublanes: (NH*T, H)
        q_stack = jnp.concatenate([q * hq_mask[h] for h in range(NUM_HEADS)], axis=0)
        scores = jnp.einsum("qd,kd->qk", q_stack, k,
                            preferred_element_type=jnp.float32) + bias    # (NH*T, T)
        m = jnp.max(scores, axis=-1, keepdims=True)
        p = jnp.exp(scores - m)
        p = p * pl.reciprocal(jnp.sum(p, axis=-1, keepdims=True), approx=True)

        # one context matmul for all heads, then fold heads back into (T, H) lanes
        pv = jnp.dot(p, v, preferred_element_type=jnp.float32)            # (NH*T, H)
        ctx = pv[0:T] * hv_mask[0]
        for h in range(1, NUM_HEADS):
            ctx = ctx + pv[h * T:(h + 1) * T] * hv_mask[h]                # (T, H)

        # ---- output projection + residual LayerNorm ----
        attn_out = jnp.dot(ctx, ow, preferred_element_type=jnp.float32) + ob
        x = ln(attn_out + x, ln1g, ln1b)

        # ---- FFN (GELU) + residual LayerNorm ----
        h1 = gelu(jnp.dot(x, w1, preferred_element_type=jnp.float32) + b1)
        ffn_out = jnp.dot(h1, w2, preferred_element_type=jnp.float32) + b2
        x = ln(ffn_out + x, ln2g, ln2b)

    # ---- classifier (one lane-dense MXU pass), then keep only the CLS rows ----
    # Dropout is identity in eval mode.
    logits_all = jnp.dot(x, cls_w, preferred_element_type=jnp.float32) + cls_b   # (T, 128)
    cls_logits = logits_all.reshape(batch, seq, CLS_PAD)[:, 0, :]                 # (batch, 128)
    logits_ref[...] = cls_logits.astype(logits_ref.dtype)


# ------------------------------ parameter init & packing ---------------------------------
def init_params(key):
    keys = jax.random.split(key, 10)

    def nrm(k, shape):
        return jax.random.normal(k, shape, jnp.float32) * 0.02

    L = NUM_LAYERS
    return {
        "word_emb": nrm(keys[0], (VOCAB, HIDDEN)),
        "pos_emb": nrm(keys[1], (MAX_POS, HIDDEN)),
        "type_emb": nrm(keys[2], (1, HIDDEN)),
        "emb_ln_g": jnp.ones((HIDDEN,), jnp.float32),
        "emb_ln_b": jnp.zeros((HIDDEN,), jnp.float32),
        "q_w": nrm(keys[3], (L, HIDDEN, HIDDEN)),
        "k_w": nrm(keys[4], (L, HIDDEN, HIDDEN)),
        "v_w": nrm(keys[5], (L, HIDDEN, HIDDEN)),
        "o_w": nrm(keys[6], (L, HIDDEN, HIDDEN)),
        "q_b": jnp.zeros((L, HIDDEN), jnp.float32),
        "k_b": jnp.zeros((L, HIDDEN), jnp.float32),
        "v_b": jnp.zeros((L, HIDDEN), jnp.float32),
        "o_b": jnp.zeros((L, HIDDEN), jnp.float32),
        "ln1_g": jnp.ones((L, HIDDEN), jnp.float32),
        "ln1_b": jnp.zeros((L, HIDDEN), jnp.float32),
        "w1": nrm(keys[7], (L, HIDDEN, INTERMEDIATE)),
        "b1": jnp.zeros((L, INTERMEDIATE), jnp.float32),
        "w2": nrm(keys[8], (L, INTERMEDIATE, HIDDEN)),
        "b2": jnp.zeros((L, HIDDEN), jnp.float32),
        "ln2_g": jnp.ones((L, HIDDEN), jnp.float32),
        "ln2_b": jnp.zeros((L, HIDDEN), jnp.float32),
        "cls_w": nrm(keys[9], (HIDDEN, NUM_LABELS)),
        "cls_b": jnp.zeros((NUM_LABELS,), jnp.float32),
    }


def pack_params(p):
    """Pack the many small parameter tensors into 2 stacked kernel inputs (fewer DMAs)."""
    lw = jnp.zeros((NUM_LAYERS, LW_ROWS, LW_COLS), jnp.float32)
    lw = lw.at[:, R_QW:R_QW + HIDDEN, :HIDDEN].set(p["q_w"])
    lw = lw.at[:, R_KW:R_KW + HIDDEN, :HIDDEN].set(p["k_w"])
    lw = lw.at[:, R_VW:R_VW + HIDDEN, :HIDDEN].set(p["v_w"])
    lw = lw.at[:, R_OW:R_OW + HIDDEN, :HIDDEN].set(p["o_w"])
    lw = lw.at[:, R_W1:R_W1 + HIDDEN, :INTERMEDIATE].set(p["w1"])
    lw = lw.at[:, R_W2:R_W2 + INTERMEDIATE, :HIDDEN].set(p["w2"])
    vec_rows = [
        (V_QB, "q_b", HIDDEN), (V_KB, "k_b", HIDDEN), (V_VB, "v_b", HIDDEN), (V_OB, "o_b", HIDDEN),
        (V_LN1G, "ln1_g", HIDDEN), (V_LN1B, "ln1_b", HIDDEN),
        (V_B1, "b1", INTERMEDIATE), (V_B2, "b2", HIDDEN),
        (V_LN2G, "ln2_g", HIDDEN), (V_LN2B, "ln2_b", HIDDEN),
    ]
    for r, name, width in vec_rows:
        lw = lw.at[:, R_VEC + r, :width].set(p[name])

    glob = jnp.zeros((G_ROWS, CLS_PAD), jnp.float32)
    glob = glob.at[G_EMBLN_G, :HIDDEN].set(p["emb_ln_g"])
    glob = glob.at[G_EMBLN_B, :HIDDEN].set(p["emb_ln_b"])
    glob = glob.at[G_CLSB, :NUM_LABELS].set(p["cls_b"])
    glob = glob.at[G_CLSW:G_CLSW + HIDDEN, :NUM_LABELS].set(p["cls_w"])

    return {
        "word_emb": p["word_emb"],
        "pos_emb": p["pos_emb"],
        "type_emb": p["type_emb"],
        "layer_params": lw,
        "globals": glob,
    }


# ------------------------------- model forward ----------------------------------
def _build_attn_bias(attention_mask):
    """(B, S) mask -> (NUM_HEADS*B*S, B*S) additive bias: block-diagonal over batch + key padding."""
    batch, seq = attention_mask.shape
    T = batch * seq
    key_keep = attention_mask.reshape(T).astype(jnp.bool_)
    seq_id = jnp.arange(T, dtype=jnp.int32) // seq
    allow = (seq_id[:, None] == seq_id[None, :]) & key_keep[None, :]
    bias = jnp.where(allow, 0.0, -1e9).astype(jnp.float32)          # (T, T)
    return jnp.tile(bias, (NUM_HEADS, 1))                           # (NH*T, T)


def camembert_logits(packed, input_ids, attention_mask):
    batch, seq = input_ids.shape
    # RoBERTa/Camembert-style position ids derived from non-pad input tokens (JAX glue)
    not_pad = (input_ids != PAD_ID).astype(jnp.int32)
    position_ids = jnp.cumsum(not_pad, axis=1) * not_pad + PAD_ID
    emb = (
        jnp.take(packed["word_emb"], input_ids, axis=0)
        + jnp.take(packed["pos_emb"], position_ids, axis=0)
        + packed["type_emb"][0][None, None, :]
    )
    emb = emb.reshape(batch * seq, HIDDEN).astype(jnp.float32)
    attn_bias = _build_attn_bias(attention_mask)

    logits_pad = pl.pallas_call(
        functools.partial(_fused_encoder_kernel, batch=batch, seq=seq),
        out_shape=jax.ShapeDtypeStruct((batch, CLS_PAD), jnp.float32),
        in_specs=[_vmem_spec()] * 4,
        out_specs=_vmem_spec(),
    )(emb, attn_bias, packed["layer_params"], packed["globals"])
    return logits_pad[:, :NUM_LABELS]


def cross_entropy(logits, labels):
    # tiny (B, num_labels) reduction -> plain JAX glue, matches nn.CrossEntropyLoss (mean)
    logp = jax.nn.log_softmax(logits, axis=-1)
    picked = jnp.take_along_axis(logp, labels[:, None], axis=1)[:, 0]
    return -jnp.mean(picked)


@jax.jit
def _forward_with_loss(packed, input_ids, attention_mask, labels):
    logits = camembert_logits(packed, input_ids, attention_mask)
    return cross_entropy(logits, labels), logits


@jax.jit
def _forward_no_loss(packed, input_ids, attention_mask):
    return camembert_logits(packed, input_ids, attention_mask)


def custom_camembert_forward(packed, input_ids, attention_mask=None, labels=None):
    if attention_mask is None:
        attention_mask = jnp.ones_like(input_ids)
    # self.dropout: identity at inference.  TODO(synk): training-mode dropout not implemented.
    if labels is not None:
        loss, logits = _forward_with_loss(packed, input_ids, attention_mask, labels)
        return loss, logits
    logits = _forward_no_loss(packed, input_ids, attention_mask)
    return None, logits


# ----------------------------------- main ---------------------------------------
if __name__ == "__main__":
    key = jax.random.PRNGKey(0)
    k_params, k_ids, k_lab = jax.random.split(key, 3)

    packed = pack_params(init_params(k_params))

    input_ids = jax.random.randint(k_ids, (B, S), 2, VOCAB, dtype=jnp.int32)
    attention_mask = jnp.ones((B, S), dtype=jnp.int32)
    # pad the tail of the second sequence to exercise the key-padding bias path
    input_ids = input_ids.at[1, -2:].set(PAD_ID)
    attention_mask = attention_mask.at[1, -2:].set(0)
    labels = jax.random.randint(k_lab, (B,), 0, NUM_LABELS, dtype=jnp.int32)

    # labels=None path (returns (None, logits))
    none_loss, logits_only = custom_camembert_forward(packed, input_ids, attention_mask)
    # labels path (returns (loss, logits))
    loss, logits = custom_camembert_forward(packed, input_ids, attention_mask, labels)

    jax.block_until_ready((logits_only, loss, logits))
    assert none_loss is None
    assert logits_only.shape == (B, NUM_LABELS)
    assert logits.shape == (B, NUM_LABELS)
    assert loss.shape == ()
    assert bool(jnp.all(jnp.isfinite(logits)))
    print("KERNEL_OK")
</pallas_src>

<mosaic_0001>
module attributes {stable_mosaic.version = 11 : i64} {
  func.func @_fused_encoder_kernel(%arg0: memref<16x32xf32, #tpu.memory_space<vmem>>, %arg1: memref<64x16xf32, #tpu.memory_space<vmem>>, %arg2: memref<2x240x64xf32, #tpu.memory_space<vmem>>, %arg3: memref<40x128xf32, #tpu.memory_space<vmem>>, %arg4: memref<2x128xf32, #tpu.memory_space<vmem>>) attributes {dimension_semantics = [], scalar_prefetch = 0 : i64, scratch_operands = 0 : i64, tpu.core_type = #tpu.core_type<tc>} {
    %c0 = arith.constant 0 : index
    %c0_0 = arith.constant 0 : index
    %0 = vector.load %arg3[%c0, %c0_0] : memref<40x128xf32, #tpu.memory_space<vmem>>, vector<1x32xf32>
    %c1 = arith.constant 1 : index
    %c0_1 = arith.constant 0 : index
    %1 = vector.load %arg3[%c1, %c0_1] : memref<40x128xf32, #tpu.memory_space<vmem>>, vector<1x32xf32>
    %c2 = arith.constant 2 : index
    %c0_2 = arith.constant 0 : index
    %2 = vector.load %arg3[%c2, %c0_2] : memref<40x128xf32, #tpu.memory_space<vmem>>, vector<1x128xf32>
    %c8 = arith.constant 8 : index
    %c0_3 = arith.constant 0 : index
    %3 = vector.load %arg3[%c8, %c0_3] : memref<40x128xf32, #tpu.memory_space<vmem>>, vector<32x128xf32>
    %c0_4 = arith.constant 0 : index
    %c0_5 = arith.constant 0 : index
    %4 = vector.load %arg0[%c0_4, %c0_5] : memref<16x32xf32, #tpu.memory_space<vmem>>, vector<16x32xf32>
    %cst = arith.constant dense<0.000000e+00> : vector<16xf32>
    %5 = vector.multi_reduction <add>, %4, %cst [1] : vector<16x32xf32> to vector<16xf32>
    %6 = vector.shape_cast %5 : vector<16xf32> to vector<16x1xf32>
    %cst_6 = arith.constant 3.200000e+01 : f32
    %7 = vector.broadcast %cst_6 : f32 to vector<16x1xf32>
    %8 = arith.divf %6, %7 : vector<16x1xf32>
    %9 = arith.mulf %4, %4 : vector<16x32xf32>
    %cst_7 = arith.constant dense<0.000000e+00> : vector<16xf32>
    %10 = vector.multi_reduction <add>, %9, %cst_7 [1] : vector<16x32xf32> to vector<16xf32>
    %11 = vector.shape_cast %10 : vector<16xf32> to vector<16x1xf32>
    %cst_8 = arith.constant 3.200000e+01 : f32
    %12 = vector.broadcast %cst_8 : f32 to vector<16x1xf32>
    %13 = arith.divf %11, %12 : vector<16x1xf32>
    %14 = arith.mulf %8, %8 : vector<16x1xf32>
    %15 = arith.subf %13, %14 : vector<16x1xf32>
    %16 = vector.broadcast %8 : vector<16x1xf32> to vector<16x32xf32>
    %17 = arith.subf %4, %16 : vector<16x32xf32>
    %cst_9 = arith.constant 9.99999974E-6 : f32
    %18 = vector.broadcast %cst_9 : f32 to vector<16x1xf32>
    %19 = arith.addf %15, %18 : vector<16x1xf32>
    %20 = math.rsqrt %19 : vector<16x1xf32>
    %21 = vector.broadcast %20 : vector<16x1xf32> to vector<16x32xf32>
    %22 = arith.mulf %17, %21 : vector<16x32xf32>
    %23 = vector.broadcast %0 : vector<1x32xf32> to vector<16x32xf32>
    %24 = arith.mulf %22, %23 : vector<16x32xf32>
    %25 = vector.broadcast %1 : vector<1x32xf32> to vector<16x32xf32>
    %26 = arith.addf %24, %25 : vector<16x32xf32>
    %c0_10 = arith.constant 0 : index
    %c0_11 = arith.constant 0 : index
    %27 = vector.load %arg1[%c0_10, %c0_11] : memref<64x16xf32, #tpu.memory_space<vmem>>, vector<64x16xf32>
    %28 = tpu.iota {dimensions = array<i32: 1>} : vector<1x32xi32>
    %c0_i32 = arith.constant 0 : i32
    %29 = vector.broadcast %c0_i32 : i32 to vector<1x32xi32>
    %30 = arith.cmpi sge, %28, %29 : vector<1x32xi32>
    %c8_i32 = arith.constant 8 : i32
    %31 = vector.broadcast %c8_i32 : i32 to vector<1x32xi32>
    %32 = arith.cmpi slt, %28, %31 : vector<1x32xi32>
    %33 = arith.andi %30, %32 : vector<1x32xi1>
    %c8_i32_12 = arith.constant 8 : i32
    %34 = vector.broadcast %c8_i32_12 : i32 to vector<1x32xi32>
    %35 = arith.cmpi sge, %28, %34 : vector<1x32xi32>
    %c16_i32 = arith.constant 16 : i32
    %36 = vector.broadcast %c16_i32 : i32 to vector<1x32xi32>
    %37 = arith.cmpi slt, %28, %36 : vector<1x32xi32>
    %38 = arith.andi %35, %37 : vector<1x32xi1>
    %c16_i32_13 = arith.constant 16 : i32
    %39 = vector.broadcast %c16_i32_13 : i32 to vector<1x32xi32>
    %40 = arith.cmpi sge, %28, %39 : vector<1x32xi32>
    %c24_i32 = arith.constant 24 : i32
    %41 = vector.broadcast %c24_i32 : i32 to vector<1x32xi32>
    %42 = arith.cmpi slt, %28, %41 : vector<1x32xi32>
    %43 = arith.andi %40, %42 : vector<1x32xi1>
    %c24_i32_14 = arith.constant 24 : i32
    %44 = vector.broadcast %c24_i32_14 : i32 to vector<1x32xi32>
    %45 = arith.cmpi sge, %28, %44 : vector<1x32xi32>
    %c32_i32 = arith.constant 32 : i32
    %46 = vector.broadcast %c32_i32 : i32 to vector<1x32xi32>
    %47 = arith.cmpi slt, %28, %46 : vector<1x32xi32>
    %48 = arith.andi %45, %47 : vector<1x32xi1>
    %cst_15 = arith.constant 0.353553385 : f32
    %cst_16 = arith.constant 0.000000e+00 : f32
    %49 = vector.broadcast %cst_15 : f32 to vector<1x32xf32>
    %50 = vector.broadcast %cst_16 : f32 to vector<1x32xf32>
    %51 = arith.select %33, %49, %50 : vector<1x32xi1>, vector<1x32xf32>
    %cst_17 = arith.constant 0.353553385 : f32
    %cst_18 = arith.constant 0.000000e+00 : f32
    %52 = vector.broadcast %cst_17 : f32 to vector<1x32xf32>
    %53 = vector.broadcast %cst_18 : f32 to vector<1x32xf32>
    %54 = arith.select %38, %52, %53 : vector<1x32xi1>, vector<1x32xf32>
    %cst_19 = arith.constant 0.353553385 : f32
    %cst_20 = arith.constant 0.000000e+00 : f32
    %55 = vector.broadcast %cst_19 : f32 to vector<1x32xf32>
    %56 = vector.broadcast %cst_20 : f32 to vector<1x32xf32>
    %57 = arith.select %43, %55, %56 : vector<1x32xi1>, vector<1x32xf32>
    %cst_21 = arith.constant 0.353553385 : f32
    %cst_22 = arith.constant 0.000000e+00 : f32
    %58 = vector.broadcast %cst_21 : f32 to vector<1x32xf32>
    %59 = vector.broadcast %cst_22 : f32 to vector<1x32xf32>
    %60 = arith.select %48, %58, %59 : vector<1x32xi1>, vector<1x32xf32>
    %cst_23 = arith.constant 1.000000e+00 : f32
    %cst_24 = arith.constant 0.000000e+00 : f32
    %61 = vector.broadcast %cst_23 : f32 to vector<1x32xf32>
    %62 = vector.broadcast %cst_24 : f32 to vector<1x32xf32>
    %63 = arith.select %33, %61, %62 : vector<1x32xi1>, vector<1x32xf32>
    %cst_25 = arith.constant 1.000000e+00 : f32
    %cst_26 = arith.constant 0.000000e+00 : f32
    %64 = vector.broadcast %cst_25 : f32 to vector<1x32xf32>
    %65 = vector.broadcast %cst_26 : f32 to vector<1x32xf32>
    %66 = arith.select %38, %64, %65 : vector<1x32xi1>, vector<1x32xf32>
    %cst_27 = arith.constant 1.000000e+00 : f32
    %cst_28 = arith.constant 0.000000e+00 : f32
    %67 = vector.broadcast %cst_27 : f32 to vector<1x32xf32>
    %68 = vector.broadcast %cst_28 : f32 to vector<1x32xf32>
    %69 = arith.select %43, %67, %68 : vector<1x32xi1>, vector<1x32xf32>
    %cst_29 = arith.constant 1.000000e+00 : f32
    %cst_30 = arith.constant 0.000000e+00 : f32
    %70 = vector.broadcast %cst_29 : f32 to vector<1x32xf32>
    %71 = vector.broadcast %cst_30 : f32 to vector<1x32xf32>
    %72 = arith.select %48, %70, %71 : vector<1x32xi1>, vector<1x32xf32>
    %c0_31 = arith.constant 0 : index
    %c0_32 = arith.constant 0 : index
    %c0_33 = arith.constant 0 : index
    %73 = vector.load %arg2[%c0_31, %c0_32, %c0_33] : memref<2x240x64xf32, #tpu.memory_space<vmem>>, vector<1x32x32xf32>
    %74 = vector.shape_cast %73 : vector<1x32x32xf32> to vector<32x32xf32>
    %c0_34 = arith.constant 0 : index
    %c32 = arith.constant 32 : index
    %c0_35 = arith.constant 0 : index
    %75 = vector.load %arg2[%c0_34, %c32, %c0_35] : memref<2x240x64xf32, #tpu.memory_space<vmem>>, vector<1x32x32xf32>
    %76 = vector.shape_cast %75 : vector<1x32x32xf32> to vector<32x32xf32>
    %c0_36 = arith.constant 0 : index
    %c64 = arith.constant 64 : index
    %c0_37 = arith.constant 0 : index
    %77 = vector.load %arg2[%c0_36, %c64, %c0_37] : memref<2x240x64xf32, #tpu.memory_space<vmem>>, vector<1x32x32xf32>
    %78 = vector.shape_cast %77 : vector<1x32x32xf32> to vector<32x32xf32>
    %c0_38 = arith.constant 0 : index
    %c96 = arith.constant 96 : index
    %c0_39 = arith.constant 0 : index
    %79 = vector.load %arg2[%c0_38, %c96, %c0_39] : memref<2x240x64xf32, #tpu.memory_space<vmem>>, vector<1x32x32xf32>
    %80 = vector.shape_cast %79 : vector<1x32x32xf32> to vector<32x32xf32>
    %c0_40 = arith.constant 0 : index
    %c128 = arith.constant 128 : index
    %c0_41 = arith.constant 0 : index
    %81 = vector.load %arg2[%c0_40, %c128, %c0_41] : memref<2x240x64xf32, #tpu.memory_space<vmem>>, vector<1x32x64xf32>
    %82 = vector.shape_cast %81 : vector<1x32x64xf32> to vector<32x64xf32>
    %c0_42 = arith.constant 0 : index
    %c160 = arith.constant 160 : index
    %c0_43 = arith.constant 0 : index
    %83 = vector.load %arg2[%c0_42, %c160, %c0_43] : memref<2x240x64xf32, #tpu.memory_space<vmem>>, vector<1x64x32xf32>
    %84 = vector.shape_cast %83 : vector<1x64x32xf32> to vector<64x32xf32>
    %c0_44 = arith.constant 0 : index
    %c224 = arith.constant 224 : index
    %c0_45 = arith.constant 0 : index
    %85 = vector.load %arg2[%c0_44, %c224, %c0_45] : memref<2x240x64xf32, #tpu.memory_space<vmem>>, vector<1x1x32xf32>
    %86 = vector.shape_cast %85 : vector<1x1x32xf32> to vector<1x32xf32>
    %c0_46 = arith.constant 0 : index
    %c225 = arith.constant 225 : index
    %c0_47 = arith.constant 0 : index
    %87 = vector.load %arg2[%c0_46, %c225, %c0_47] : memref<2x240x64xf32, #tpu.memory_space<vmem>>, vector<1x1x32xf32>
    %88 = vector.shape_cast %87 : vector<1x1x32xf32> to vector<1x32xf32>
    %c0_48 = arith.constant 0 : index
    %c226 = arith.constant 226 : index
    %c0_49 = arith.constant 0 : index
    %89 = vector.load %arg2[%c0_48, %c226, %c0_49] : memref<2x240x64xf32, #tpu.memory_space<vmem>>, vector<1x1x32xf32>
    %90 = vector.shape_cast %89 : vector<1x1x32xf32> to vector<1x32xf32>
    %c0_50 = arith.constant 0 : index
    %c227 = arith.constant 227 : index
    %c0_51 = arith.constant 0 : index
    %91 = vector.load %arg2[%c0_50, %c227, %c0_51] : memref<2x240x64xf32, #tpu.memory_space<vmem>>, vector<1x1x32xf32>
    %92 = vector.shape_cast %91 : vector<1x1x32xf32> to vector<1x32xf32>
    %c0_52 = arith.constant 0 : index
    %c228 = arith.constant 228 : index
    %c0_53 = arith.constant 0 : index
    %93 = vector.load %arg2[%c0_52, %c228, %c0_53] : memref<2x240x64xf32, #tpu.memory_space<vmem>>, vector<1x1x32xf32>
    %94 = vector.shape_cast %93 : vector<1x1x32xf32> to vector<1x32xf32>
    %c0_54 = arith.constant 0 : index
    %c229 = arith.constant 229 : index
    %c0_55 = arith.constant 0 : index
    %95 = vector.load %arg2[%c0_54, %c229, %c0_55] : memref<2x240x64xf32, #tpu.memory_space<vmem>>, vector<1x1x32xf32>
    %96 = vector.shape_cast %95 : vector<1x1x32xf32> to vector<1x32xf32>
    %c0_56 = arith.constant 0 : index
    %c230 = arith.constant 230 : index
    %c0_57 = arith.constant 0 : index
    %97 = vector.load %arg2[%c0_56, %c230, %c0_57] : memref<2x240x64xf32, #tpu.memory_space<vmem>>, vector<1x1x64xf32>
    %98 = vector.shape_cast %97 : vector<1x1x64xf32> to vector<1x64xf32>
    %c0_58 = arith.constant 0 : index
    %c231 = arith.constant 231 : index
    %c0_59 = arith.constant 0 : index
    %99 = vector.load %arg2[%c0_58, %c231, %c0_59] : memref<2x240x64xf32, #tpu.memory_space<vmem>>, vector<1x1x32xf32>
    %100 = vector.shape_cast %99 : vector<1x1x32xf32> to vector<1x32xf32>
    %c0_60 = arith.constant 0 : index
    %c232 = arith.constant 232 : index
    %c0_61 = arith.constant 0 : index
    %101 = vector.load %arg2[%c0_60, %c232, %c0_61] : memref<2x240x64xf32, #tpu.memory_space<vmem>>, vector<1x1x32xf32>
    %102 = vector.shape_cast %101 : vector<1x1x32xf32> to vector<1x32xf32>
    %c0_62 = arith.constant 0 : index
    %c233 = arith.constant 233 : index
    %c0_63 = arith.constant 0 : index
    %103 = vector.load %arg2[%c0_62, %c233, %c0_63] : memref<2x240x64xf32, #tpu.memory_space<vmem>>, vector<1x1x32xf32>
    %104 = vector.shape_cast %103 : vector<1x1x32xf32> to vector<1x32xf32>
    %cst_64 = arith.constant dense<0.000000e+00> : vector<16x32xf32>
    %105 = tpu.matmul %26, %74, %cst_64 {dimension_numbers = #tpu.dot_dimension_numbers<[1], [0], [0], [1], [0, 0, 1, 1], [], []>} : vector<16x32xf32>, vector<32x32xf32>, vector<16x32xf32> -> vector<16x32xf32>
    %106 = vector.broadcast %86 : vector<1x32xf32> to vector<16x32xf32>
    %107 = arith.addf %105, %106 : vector<16x32xf32>
    %cst_65 = arith.constant dense<0.000000e+00> : vector<16x32xf32>
    %108 = tpu.matmul %26, %76, %cst_65 {dimension_numbers = #tpu.dot_dimension_numbers<[1], [0], [0], [1], [0, 0, 1, 1], [], []>} : vector<16x32xf32>, vector<32x32xf32>, vector<16x32xf32> -> vector<16x32xf32>
    %109 = vector.broadcast %88 : vector<1x32xf32> to vector<16x32xf32>
    %110 = arith.addf %108, %109 : vector<16x32xf32>
    %cst_66 = arith.constant dense<0.000000e+00> : vector<16x32xf32>
    %111 = tpu.matmul %26, %78, %cst_66 {dimension_numbers = #tpu.dot_dimension_numbers<[1], [0], [0], [1], [0, 0, 1, 1], [], []>} : vector<16x32xf32>, vector<32x32xf32>, vector<16x32xf32> -> vector<16x32xf32>
    %112 = vector.broadcast %90 : vector<1x32xf32> to vector<16x32xf32>
    %113 = arith.addf %111, %112 : vector<16x32xf32>
    %114 = vector.broadcast %51 : vector<1x32xf32> to vector<16x32xf32>
    %115 = arith.mulf %107, %114 : vector<16x32xf32>
    %116 = vector.broadcast %54 : vector<1x32xf32> to vector<16x32xf32>
    %117 = arith.mulf %107, %116 : vector<16x32xf32>
    %118 = vector.broadcast %57 : vector<1x32xf32> to vector<16x32xf32>
    %119 = arith.mulf %107, %118 : vector<16x32xf32>
    %120 = vector.broadcast %60 : vector<1x32xf32> to vector<16x32xf32>
    %121 = arith.mulf %107, %120 : vector<16x32xf32>
    %122 = tpu.concatenate %115, %117, %119, %121 in 0 : vector<16x32xf32>, vector<16x32xf32>, vector<16x32xf32>, vector<16x32xf32> -> vector<64x32xf32>
    "tpu.trace_start"() <{level = 10 : i32, message = "qd,kd->qk"}> : () -> ()
    %cst_67 = arith.constant dense<0.000000e+00> : vector<64x16xf32>
    %123 = tpu.matmul %122, %110, %cst_67 {dimension_numbers = #tpu.dot_dimension_numbers<[1], [1], [0], [0], [0, 0, 1, 0], [], []>} : vector<64x32xf32>, vector<16x32xf32>, vector<64x16xf32> -> vector<64x16xf32>
    "tpu.trace_stop"() : () -> ()
    %124 = arith.addf %123, %27 : vector<64x16xf32>
    %cst_68 = arith.constant dense<0xFF800000> : vector<64xf32>
    %125 = vector.multi_reduction <maximumf>, %124, %cst_68 [1] : vector<64x16xf32> to vector<64xf32>
    %126 = vector.shape_cast %125 : vector<64xf32> to vector<64x1xf32>
    %127 = vector.broadcast %126 : vector<64x1xf32> to vector<64x16xf32>
    %128 = arith.subf %124, %127 : vector<64x16xf32>
    %129 = math.exp %128 : vector<64x16xf32>
    %cst_69 = arith.constant dense<0.000000e+00> : vector<64xf32>
    %130 = vector.multi_reduction <add>, %129, %cst_69 [1] : vector<64x16xf32> to vector<64xf32>
    %131 = vector.shape_cast %130 : vector<64xf32> to vector<64x1xf32>
    %132 = tpu.reciprocal %131 {approx = true} : vector<64x1xf32> -> vector<64x1xf32>
    %133 = vector.broadcast %132 : vector<64x1xf32> to vector<64x16xf32>
    %134 = arith.mulf %129, %133 : vector<64x16xf32>
    %cst_70 = arith.constant dense<0.000000e+00> : vector<64x32xf32>
    %135 = tpu.matmul %134, %113, %cst_70 {dimension_numbers = #tpu.dot_dimension_numbers<[1], [0], [0], [1], [0, 0, 1, 1], [], []>} : vector<64x16xf32>, vector<16x32xf32>, vector<64x32xf32> -> vector<64x32xf32>
    %136 = vector.extract_strided_slice %135 {offsets = [0, 0], sizes = [16, 32], strides = [1, 1]} : vector<64x32xf32> to vector<16x32xf32>
    %137 = vector.broadcast %63 : vector<1x32xf32> to vector<16x32xf32>
    %138 = arith.mulf %136, %137 : vector<16x32xf32>
    %139 = vector.extract_strided_slice %135 {offsets = [16, 0], sizes = [16, 32], strides = [1, 1]} : vector<64x32xf32> to vector<16x32xf32>
    %140 = vector.broadcast %66 : vector<1x32xf32> to vector<16x32xf32>
    %141 = arith.mulf %139, %140 : vector<16x32xf32>
    %142 = arith.addf %138, %141 : vector<16x32xf32>
    %143 = vector.extract_strided_slice %135 {offsets = [32, 0], sizes = [16, 32], strides = [1, 1]} : vector<64x32xf32> to vector<16x32xf32>
    %144 = vector.broadcast %69 : vector<1x32xf32> to vector<16x32xf32>
    %145 = arith.mulf %143, %144 : vector<16x32xf32>
    %146 = arith.addf %142, %145 : vector<16x32xf32>
    %147 = vector.extract_strided_slice %135 {offsets = [48, 0], sizes = [16, 32], strides = [1, 1]} : vector<64x32xf32> to vector<16x32xf32>
    %148 = vector.broadcast %72 : vector<1x32xf32> to vector<16x32xf32>
    %149 = arith.mulf %147, %148 : vector<16x32xf32>
    %150 = arith.addf %146, %149 : vector<16x32xf32>
    %cst_71 = arith.constant dense<0.000000e+00> : vector<16x32xf32>
    %151 = tpu.matmul %150, %80, %cst_71 {dimension_numbers = #tpu.dot_dimension_numbers<[1], [0], [0], [1], [0, 0, 1, 1], [], []>} : vector<16x32xf32>, vector<32x32xf32>, vector<16x32xf32> -> vector<16x32xf32>
    %152 = vector.broadcast %92 : vector<1x32xf32> to vector<16x32xf32>
    %153 = arith.addf %151, %152 : vector<16x32xf32>
    %154 = arith.addf %153, %26 : vector<16x32xf32>
    %cst_72 = arith.constant dense<0.000000e+00> : vector<16xf32>
    %155 = vector.multi_reduction <add>, %154, %cst_72 [1] : vector<16x32xf32> to vector<16xf32>
    %156 = vector.shape_cast %155 : vector<16xf32> to vector<16x1xf32>
    %cst_73 = arith.constant 3.200000e+01 : f32
    %157 = vector.broadcast %cst_73 : f32 to vector<16x1xf32>
    %158 = arith.divf %156, %157 : vector<16x1xf32>
    %159 = arith.mulf %154, %154 : vector<16x32xf32>
    %cst_74 = arith.constant dense<0.000000e+00> : vector<16xf32>
    %160 = vector.multi_reduction <add>, %159, %cst_74 [1] : vector<16x32xf32> to vector<16xf32>
    %161 = vector.shape_cast %160 : vector<16xf32> to vector<16x1xf32>
    %cst_75 = arith.constant 3.200000e+01 : f32
    %162 = vector.broadcast %cst_75 : f32 to vector<16x1xf32>
    %163 = arith.divf %161, %162 : vector<16x1xf32>
    %164 = arith.mulf %158, %158 : vector<16x1xf32>
    %165 = arith.subf %163, %164 : vector<16x1xf32>
    %166 = vector.broadcast %158 : vector<16x1xf32> to vector<16x32xf32>
    %167 = arith.subf %154, %166 : vector<16x32xf32>
    %cst_76 = arith.constant 9.99999974E-6 : f32
    %168 = vector.broadcast %cst_76 : f32 to vector<16x1xf32>
    %169 = arith.addf %165, %168 : vector<16x1xf32>
    %170 = math.rsqrt %169 : vector<16x1xf32>
    %171 = vector.broadcast %170 : vector<16x1xf32> to vector<16x32xf32>
    %172 = arith.mulf %167, %171 : vector<16x32xf32>
    %173 = vector.broadcast %94 : vector<1x32xf32> to vector<16x32xf32>
    %174 = arith.mulf %172, %173 : vector<16x32xf32>
    %175 = vector.broadcast %96 : vector<1x32xf32> to vector<16x32xf32>
    %176 = arith.addf %174, %175 : vector<16x32xf32>
    %cst_77 = arith.constant dense<0.000000e+00> : vector<16x64xf32>
    %177 = tpu.matmul %176, %82, %cst_77 {dimension_numbers = #tpu.dot_dimension_numbers<[1], [0], [0], [1], [0, 0, 1, 1], [], []>} : vector<16x32xf32>, vector<32x64xf32>, vector<16x64xf32> -> vector<16x64xf32>
    %178 = vector.broadcast %98 : vector<1x64xf32> to vector<16x64xf32>
    %179 = arith.addf %177, %178 : vector<16x64xf32>
    %cst_78 = arith.constant 5.000000e-01 : f32
    %180 = vector.broadcast %cst_78 : f32 to vector<16x64xf32>
    %181 = arith.mulf %180, %179 : vector<16x64xf32>
    %cst_79 = arith.constant 4.471500e-02 : f32
    %182 = vector.broadcast %cst_79 : f32 to vector<16x64xf32>
    %183 = arith.mulf %182, %179 : vector<16x64xf32>
    %184 = arith.mulf %183, %179 : vector<16x64xf32>
    %185 = arith.mulf %184, %179 : vector<16x64xf32>
    %186 = arith.addf %179, %185 : vector<16x64xf32>
    %cst_80 = arith.constant 0.797884583 : f32
    %187 = vector.broadcast %cst_80 : f32 to vector<16x64xf32>
    %188 = arith.mulf %187, %186 : vector<16x64xf32>
    %189 = math.tanh %188 : vector<16x64xf32>
    %cst_81 = arith.constant 1.000000e+00 : f32
    %190 = vector.broadcast %cst_81 : f32 to vector<16x64xf32>
    %191 = arith.addf %190, %189 : vector<16x64xf32>
    %192 = arith.mulf %181, %191 : vector<16x64xf32>
    %cst_82 = arith.constant dense<0.000000e+00> : vector<16x32xf32>
    %193 = tpu.matmul %192, %84, %cst_82 {dimension_numbers = #tpu.dot_dimension_numbers<[1], [0], [0], [1], [0, 0, 1, 1], [], []>} : vector<16x64xf32>, vector<64x32xf32>, vector<16x32xf32> -> vector<16x32xf32>
    %194 = vector.broadcast %100 : vector<1x32xf32> to vector<16x32xf32>
    %195 = arith.addf %193, %194 : vector<16x32xf32>
    %196 = arith.addf %195, %176 : vector<16x32xf32>
    %cst_83 = arith.constant dense<0.000000e+00> : vector<16xf32>
    %197 = vector.multi_reduction <add>, %196, %cst_83 [1] : vector<16x32xf32> to vector<16xf32>
    %198 = vector.shape_cast %197 : vector<16xf32> to vector<16x1xf32>
    %cst_84 = arith.constant 3.200000e+01 : f32
    %199 = vector.broadcast %cst_84 : f32 to vector<16x1xf32>
    %200 = arith.divf %198, %199 : vector<16x1xf32>
    %201 = arith.mulf %196, %196 : vector<16x32xf32>
    %cst_85 = arith.constant dense<0.000000e+00> : vector<16xf32>
    %202 = vector.multi_reduction <add>, %201, %cst_85 [1] : vector<16x32xf32> to vector<16xf32>
    %203 = vector.shape_cast %202 : vector<16xf32> to vector<16x1xf32>
    %cst_86 = arith.constant 3.200000e+01 : f32
    %204 = vector.broadcast %cst_86 : f32 to vector<16x1xf32>
    %205 = arith.divf %203, %204 : vector<16x1xf32>
    %206 = arith.mulf %200, %200 : vector<16x1xf32>
    %207 = arith.subf %205, %206 : vector<16x1xf32>
    %208 = vector.broadcast %200 : vector<16x1xf32> to vector<16x32xf32>
    %209 = arith.subf %196, %208 : vector<16x32xf32>
    %cst_87 = arith.constant 9.99999974E-6 : f32
    %210 = vector.broadcast %cst_87 : f32 to vector<16x1xf32>
    %211 = arith.addf %207, %210 : vector<16x1xf32>
    %212 = math.rsqrt %211 : vector<16x1xf32>
    %213 = vector.broadcast %212 : vector<16x1xf32> to vector<16x32xf32>
    %214 = arith.mulf %209, %213 : vector<16x32xf32>
    %215 = vector.broadcast %102 : vector<1x32xf32> to vector<16x32xf32>
    %216 = arith.mulf %214, %215 : vector<16x32xf32>
    %217 = vector.broadcast %104 : vector<1x32xf32> to vector<16x32xf32>
    %218 = arith.addf %216, %217 : vector<16x32xf32>
    %c1_88 = arith.constant 1 : index
    %c0_89 = arith.constant 0 : index
    %c0_90 = arith.constant 0 : index
    %219 = vector.load %arg2[%c1_88, %c0_89, %c0_90] : memref<2x240x64xf32, #tpu.memory_space<vmem>>, vector<1x32x32xf32>
    %220 = vector.shape_cast %219 : vector<1x32x32xf32> to vector<32x32xf32>
    %c1_91 = arith.constant 1 : index
    %c32_92 = arith.constant 32 : index
    %c0_93 = arith.constant 0 : index
    %221 = vector.load %arg2[%c1_91, %c32_92, %c0_93] : memref<2x240x64xf32, #tpu.memory_space<vmem>>, vector<1x32x32xf32>
    %222 = vector.shape_cast %221 : vector<1x32x32xf32> to vector<32x32xf32>
    %c1_94 = arith.constant 1 : index
    %c64_95 = arith.constant 64 : index
    %c0_96 = arith.constant 0 : index
    %223 = vector.load %arg2[%c1_94, %c64_95, %c0_96] : memref<2x240x64xf32, #tpu.memory_space<vmem>>, vector<1x32x32xf32>
    %224 = vector.shape_cast %223 : vector<1x32x32xf32> to vector<32x32xf32>
    %c1_97 = arith.constant 1 : index
    %c96_98 = arith.constant 96 : index
    %c0_99 = arith.constant 0 : index
    %225 = vector.load %arg2[%c1_97, %c96_98, %c0_99] : memref<2x240x64xf32, #tpu.memory_space<vmem>>, vector<1x32x32xf32>
    %226 = vector.shape_cast %225 : vector<1x32x32xf32> to vector<32x32xf32>
    %c1_100 = arith.constant 1 : index
    %c128_101 = arith.constant 128 : index
    %c0_102 = arith.constant 0 : index
    %227 = vector.load %arg2[%c1_100, %c128_101, %c0_102] : memref<2x240x64xf32, #tpu.memory_space<vmem>>, vector<1x32x64xf32>
    %228 = vector.shape_cast %227 : vector<1x32x64xf32> to vector<32x64xf32>
    %c1_103 = arith.constant 1 : index
    %c160_104 = arith.constant 160 : index
    %c0_105 = arith.constant 0 : index
    %229 = vector.load %arg2[%c1_103, %c160_104, %c0_105] : memref<2x240x64xf32, #tpu.memory_space<vmem>>, vector<1x64x32xf32>
    %230 = vector.shape_cast %229 : vector<1x64x32xf32> to vector<64x32xf32>
    %c1_106 = arith.constant 1 : index
    %c224_107 = arith.constant 224 : index
    %c0_108 = arith.constant 0 : index
    %231 = vector.load %arg2[%c1_106, %c224_107, %c0_108] : memref<2x240x64xf32, #tpu.memory_space<vmem>>, vector<1x1x32xf32>
    %232 = vector.shape_cast %231 : vector<1x1x32xf32> to vector<1x32xf32>
    %c1_109 = arith.constant 1 : index
    %c225_110 = arith.constant 225 : index
    %c0_111 = arith.constant 0 : index
    %233 = vector.load %arg2[%c1_109, %c225_110, %c0_111] : memref<2x240x64xf32, #tpu.memory_space<vmem>>, vector<1x1x32xf32>
    %234 = vector.shape_cast %233 : vector<1x1x32xf32> to vector<1x32xf32>
    %c1_112 = arith.constant 1 : index
    %c226_113 = arith.constant 226 : index
    %c0_114 = arith.constant 0 : index
    %235 = vector.load %arg2[%c1_112, %c226_113, %c0_114] : memref<2x240x64xf32, #tpu.memory_space<vmem>>, vector<1x1x32xf32>
    %236 = vector.shape_cast %235 : vector<1x1x32xf32> to vector<1x32xf32>
    %c1_115 = arith.constant 1 : index
    %c227_116 = arith.constant 227 : index
    %c0_117 = arith.constant 0 : index
    %237 = vector.load %arg2[%c1_115, %c227_116, %c0_117] : memref<2x240x64xf32, #tpu.memory_space<vmem>>, vector<1x1x32xf32>
    %238 = vector.shape_cast %237 : vector<1x1x32xf32> to vector<1x32xf32>
    %c1_118 = arith.constant 1 : index
    %c228_119 = arith.constant 228 : index
    %c0_120 = arith.constant 0 : index
    %239 = vector.load %arg2[%c1_118, %c228_119, %c0_120] : memref<2x240x64xf32, #tpu.memory_space<vmem>>, vector<1x1x32xf32>
    %240 = vector.shape_cast %239 : vector<1x1x32xf32> to vector<1x32xf32>
    %c1_121 = arith.constant 1 : index
    %c229_122 = arith.constant 229 : index
    %c0_123 = arith.constant 0 : index
    %241 = vector.load %arg2[%c1_121, %c229_122, %c0_123] : memref<2x240x64xf32, #tpu.memory_space<vmem>>, vector<1x1x32xf32>
    %242 = vector.shape_cast %241 : vector<1x1x32xf32> to vector<1x32xf32>
    %c1_124 = arith.constant 1 : index
    %c230_125 = arith.constant 230 : index
    %c0_126 = arith.constant 0 : index
    %243 = vector.load %arg2[%c1_124, %c230_125, %c0_126] : memref<2x240x64xf32, #tpu.memory_space<vmem>>, vector<1x1x64xf32>
    %244 = vector.shape_cast %243 : vector<1x1x64xf32> to vector<1x64xf32>
    %c1_127 = arith.constant 1 : index
    %c231_128 = arith.constant 231 : index
    %c0_129 = arith.constant 0 : index
    %245 = vector.load %arg2[%c1_127, %c231_128, %c0_129] : memref<2x240x64xf32, #tpu.memory_space<vmem>>, vector<1x1x32xf32>
    %246 = vector.shape_cast %245 : vector<1x1x32xf32> to vector<1x32xf32>
    %c1_130 = arith.constant 1 : index
    %c232_131 = arith.constant 232 : index
    %c0_132 = arith.constant 0 : index
    %247 = vector.load %arg2[%c1_130, %c232_131, %c0_132] : memref<2x240x64xf32, #tpu.memory_space<vmem>>, vector<1x1x32xf32>
    %248 = vector.shape_cast %247 : vector<1x1x32xf32> to vector<1x32xf32>
    %c1_133 = arith.constant 1 : index
    %c233_134 = arith.constant 233 : index
    %c0_135 = arith.constant 0 : index
    %249 = vector.load %arg2[%c1_133, %c233_134, %c0_135] : memref<2x240x64xf32, #tpu.memory_space<vmem>>, vector<1x1x32xf32>
    %250 = vector.shape_cast %249 : vector<1x1x32xf32> to vector<1x32xf32>
    %cst_136 = arith.constant dense<0.000000e+00> : vector<16x32xf32>
    %251 = tpu.matmul %218, %220, %cst_136 {dimension_numbers = #tpu.dot_dimension_numbers<[1], [0], [0], [1], [0, 0, 1, 1], [], []>} : vector<16x32xf32>, vector<32x32xf32>, vector<16x32xf32> -> vector<16x32xf32>
    %252 = vector.broadcast %232 : vector<1x32xf32> to vector<16x32xf32>
    %253 = arith.addf %251, %252 : vector<16x32xf32>
    %cst_137 = arith.constant dense<0.000000e+00> : vector<16x32xf32>
    %254 = tpu.matmul %218, %222, %cst_137 {dimension_numbers = #tpu.dot_dimension_numbers<[1], [0], [0], [1], [0, 0, 1, 1], [], []>} : vector<16x32xf32>, vector<32x32xf32>, vector<16x32xf32> -> vector<16x32xf32>
    %255 = vector.broadcast %234 : vector<1x32xf32> to vector<16x32xf32>
    %256 = arith.addf %254, %255 : vector<16x32xf32>
    %cst_138 = arith.constant dense<0.000000e+00> : vector<16x32xf32>
    %257 = tpu.matmul %218, %224, %cst_138 {dimension_numbers = #tpu.dot_dimension_numbers<[1], [0], [0], [1], [0, 0, 1, 1], [], []>} : vector<16x32xf32>, vector<32x32xf32>, vector<16x32xf32> -> vector<16x32xf32>
    %258 = vector.broadcast %236 : vector<1x32xf32> to vector<16x32xf32>
    %259 = arith.addf %257, %258 : vector<16x32xf32>
    %260 = vector.broadcast %51 : vector<1x32xf32> to vector<16x32xf32>
    %261 = arith.mulf %253, %260 : vector<16x32xf32>
    %262 = vector.broadcast %54 : vector<1x32xf32> to vector<16x32xf32>
    %263 = arith.mulf %253, %262 : vector<16x32xf32>
    %264 = vector.broadcast %57 : vector<1x32xf32> to vector<16x32xf32>
    %265 = arith.mulf %253, %264 : vector<16x32xf32>
    %266 = vector.broadcast %60 : vector<1x32xf32> to vector<16x32xf32>
    %267 = arith.mulf %253, %266 : vector<16x32xf32>
    %268 = tpu.concatenate %261, %263, %265, %267 in 0 : vector<16x32xf32>, vector<16x32xf32>, vector<16x32xf32>, vector<16x32xf32> -> vector<64x32xf32>
    "tpu.trace_start"() <{level = 10 : i32, message = "qd,kd->qk"}> : () -> ()
    %cst_139 = arith.constant dense<0.000000e+00> : vector<64x16xf32>
    %269 = tpu.matmul %268, %256, %cst_139 {dimension_numbers = #tpu.dot_dimension_numbers<[1], [1], [0], [0], [0, 0, 1, 0], [], []>} : vector<64x32xf32>, vector<16x32xf32>, vector<64x16xf32> -> vector<64x16xf32>
    "tpu.trace_stop"() : () -> ()
    %270 = arith.addf %269, %27 : vector<64x16xf32>
    %cst_140 = arith.constant dense<0xFF800000> : vector<64xf32>
    %271 = vector.multi_reduction <maximumf>, %270, %cst_140 [1] : vector<64x16xf32> to vector<64xf32>
    %272 = vector.shape_cast %271 : vector<64xf32> to vector<64x1xf32>
    %273 = vector.broadcast %272 : vector<64x1xf32> to vector<64x16xf32>
    %274 = arith.subf %270, %273 : vector<64x16xf32>
    %275 = math.exp %274 : vector<64x16xf32>
    %cst_141 = arith.constant dense<0.000000e+00> : vector<64xf32>
    %276 = vector.multi_reduction <add>, %275, %cst_141 [1] : vector<64x16xf32> to vector<64xf32>
    %277 = vector.shape_cast %276 : vector<64xf32> to vector<64x1xf32>
    %278 = tpu.reciprocal %277 {approx = true} : vector<64x1xf32> -> vector<64x1xf32>
    %279 = vector.broadcast %278 : vector<64x1xf32> to vector<64x16xf32>
    %280 = arith.mulf %275, %279 : vector<64x16xf32>
    %cst_142 = arith.constant dense<0.000000e+00> : vector<64x32xf32>
    %281 = tpu.matmul %280, %259, %cst_142 {dimension_numbers = #tpu.dot_dimension_numbers<[1], [0], [0], [1], [0, 0, 1, 1], [], []>} : vector<64x16xf32>, vector<16x32xf32>, vector<64x32xf32> -> vector<64x32xf32>
    %282 = vector.extract_strided_slice %281 {offsets = [0, 0], sizes = [16, 32], strides = [1, 1]} : vector<64x32xf32> to vector<16x32xf32>
    %283 = vector.broadcast %63 : vector<1x32xf32> to vector<16x32xf32>
    %284 = arith.mulf %282, %283 : vector<16x32xf32>
    %285 = vector.extract_strided_slice %281 {offsets = [16, 0], sizes = [16, 32], strides = [1, 1]} : vector<64x32xf32> to vector<16x32xf32>
    %286 = vector.broadcast %66 : vector<1x32xf32> to vector<16x32xf32>
    %287 = arith.mulf %285, %286 : vector<16x32xf32>
    %288 = arith.addf %284, %287 : vector<16x32xf32>
    %289 = vector.extract_strided_slice %281 {offsets = [32, 0], sizes = [16, 32], strides = [1, 1]} : vector<64x32xf32> to vector<16x32xf32>
    %290 = vector.broadcast %69 : vector<1x32xf32> to vector<16x32xf32>
    %291 = arith.mulf %289, %290 : vector<16x32xf32>
    %292 = arith.addf %288, %291 : vector<16x32xf32>
    %293 = vector.extract_strided_slice %281 {offsets = [48, 0], sizes = [16, 32], strides = [1, 1]} : vector<64x32xf32> to vector<16x32xf32>
    %294 = vector.broadcast %72 : vector<1x32xf32> to vector<16x32xf32>
    %295 = arith.mulf %293, %294 : vector<16x32xf32>
    %296 = arith.addf %292, %295 : vector<16x32xf32>
    %cst_143 = arith.constant dense<0.000000e+00> : vector<16x32xf32>
    %297 = tpu.matmul %296, %226, %cst_143 {dimension_numbers = #tpu.dot_dimension_numbers<[1], [0], [0], [1], [0, 0, 1, 1], [], []>} : vector<16x32xf32>, vector<32x32xf32>, vector<16x32xf32> -> vector<16x32xf32>
    %298 = vector.broadcast %238 : vector<1x32xf32> to vector<16x32xf32>
    %299 = arith.addf %297, %298 : vector<16x32xf32>
    %300 = arith.addf %299, %218 : vector<16x32xf32>
    %cst_144 = arith.constant dense<0.000000e+00> : vector<16xf32>
    %301 = vector.multi_reduction <add>, %300, %cst_144 [1] : vector<16x32xf32> to vector<16xf32>
    %302 = vector.shape_cast %301 : vector<16xf32> to vector<16x1xf32>
    %cst_145 = arith.constant 3.200000e+01 : f32
    %303 = vector.broadcast %cst_145 : f32 to vector<16x1xf32>
    %304 = arith.divf %302, %303 : vector<16x1xf32>
    %305 = arith.mulf %300, %300 : vector<16x32xf32>
    %cst_146 = arith.constant dense<0.000000e+00> : vector<16xf32>
    %306 = vector.multi_reduction <add>, %305, %cst_146 [1] : vector<16x32xf32> to vector<16xf32>
    %307 = vector.shape_cast %306 : vector<16xf32> to vector<16x1xf32>
    %cst_147 = arith.constant 3.200000e+01 : f32
    %308 = vector.broadcast %cst_147 : f32 to vector<16x1xf32>
    %309 = arith.divf %307, %308 : vector<16x1xf32>
    %310 = arith.mulf %304, %304 : vector<16x1xf32>
    %311 = arith.subf %309, %310 : vector<16x1xf32>
    %312 = vector.broadcast %304 : vector<16x1xf32> to vector<16x32xf32>
    %313 = arith.subf %300, %312 : vector<16x32xf32>
    %cst_148 = arith.constant 9.99999974E-6 : f32
    %314 = vector.broadcast %cst_148 : f32 to vector<16x1xf32>
    %315 = arith.addf %311, %314 : vector<16x1xf32>
    %316 = math.rsqrt %315 : vector<16x1xf32>
    %317 = vector.broadcast %316 : vector<16x1xf32> to vector<16x32xf32>
    %318 = arith.mulf %313, %317 : vector<16x32xf32>
    %319 = vector.broadcast %240 : vector<1x32xf32> to vector<16x32xf32>
    %320 = arith.mulf %318, %319 : vector<16x32xf32>
    %321 = vector.broadcast %242 : vector<1x32xf32> to vector<16x32xf32>
    %322 = arith.addf %320, %321 : vector<16x32xf32>
    %cst_149 = arith.constant dense<0.000000e+00> : vector<16x64xf32>
    %323 = tpu.matmul %322, %228, %cst_149 {dimension_numbers = #tpu.dot_dimension_numbers<[1], [0], [0], [1], [0, 0, 1, 1], [], []>} : vector<16x32xf32>, vector<32x64xf32>, vector<16x64xf32> -> vector<16x64xf32>
    %324 = vector.broadcast %244 : vector<1x64xf32> to vector<16x64xf32>
    %325 = arith.addf %323, %324 : vector<16x64xf32>
    %cst_150 = arith.constant 5.000000e-01 : f32
    %326 = vector.broadcast %cst_150 : f32 to vector<16x64xf32>
    %327 = arith.mulf %326, %325 : vector<16x64xf32>
    %cst_151 = arith.constant 4.471500e-02 : f32
    %328 = vector.broadcast %cst_151 : f32 to vector<16x64xf32>
    %329 = arith.mulf %328, %325 : vector<16x64xf32>
    %330 = arith.mulf %329, %325 : vector<16x64xf32>
    %331 = arith.mulf %330, %325 : vector<16x64xf32>
    %332 = arith.addf %325, %331 : vector<16x64xf32>
    %cst_152 = arith.constant 0.797884583 : f32
    %333 = vector.broadcast %cst_152 : f32 to vector<16x64xf32>
    %334 = arith.mulf %333, %332 : vector<16x64xf32>
    %335 = math.tanh %334 : vector<16x64xf32>
    %cst_153 = arith.constant 1.000000e+00 : f32
    %336 = vector.broadcast %cst_153 : f32 to vector<16x64xf32>
    %337 = arith.addf %336, %335 : vector<16x64xf32>
    %338 = arith.mulf %327, %337 : vector<16x64xf32>
    %cst_154 = arith.constant dense<0.000000e+00> : vector<16x32xf32>
    %339 = tpu.matmul %338, %230, %cst_154 {dimension_numbers = #tpu.dot_dimension_numbers<[1], [0], [0], [1], [0, 0, 1, 1], [], []>} : vector<16x64xf32>, vector<64x32xf32>, vector<16x32xf32> -> vector<16x32xf32>
    %340 = vector.broadcast %246 : vector<1x32xf32> to vector<16x32xf32>
    %341 = arith.addf %339, %340 : vector<16x32xf32>
    %342 = arith.addf %341, %322 : vector<16x32xf32>
    %cst_155 = arith.constant dense<0.000000e+00> : vector<16xf32>
    %343 = vector.multi_reduction <add>, %342, %cst_155 [1] : vector<16x32xf32> to vector<16xf32>
    %344 = vector.shape_cast %343 : vector<16xf32> to vector<16x1xf32>
    %cst_156 = arith.constant 3.200000e+01 : f32
    %345 = vector.broadcast %cst_156 : f32 to vector<16x1xf32>
    %346 = arith.divf %344, %345 : vector<16x1xf32>
    %347 = arith.mulf %342, %342 : vector<16x32xf32>
    %cst_157 = arith.constant dense<0.000000e+00> : vector<16xf32>
    %348 = vector.multi_reduction <add>, %347, %cst_157 [1] : vector<16x32xf32> to vector<16xf32>
    %349 = vector.shape_cast %348 : vector<16xf32> to vector<16x1xf32>
    %cst_158 = arith.constant 3.200000e+01 : f32
    %350 = vector.broadcast %cst_158 : f32 to vector<16x1xf32>
    %351 = arith.divf %349, %350 : vector<16x1xf32>
    %352 = arith.mulf %346, %346 : vector<16x1xf32>
    %353 = arith.subf %351, %352 : vector<16x1xf32>
    %354 = vector.broadcast %346 : vector<16x1xf32> to vector<16x32xf32>
    %355 = arith.subf %342, %354 : vector<16x32xf32>
    %cst_159 = arith.constant 9.99999974E-6 : f32
    %356 = vector.broadcast %cst_159 : f32 to vector<16x1xf32>
    %357 = arith.addf %353, %356 : vector<16x1xf32>
    %358 = math.rsqrt %357 : vector<16x1xf32>
    %359 = vector.broadcast %358 : vector<16x1xf32> to vector<16x32xf32>
    %360 = arith.mulf %355, %359 : vector<16x32xf32>
    %361 = vector.broadcast %248 : vector<1x32xf32> to vector<16x32xf32>
    %362 = arith.mulf %360, %361 : vector<16x32xf32>
    %363 = vector.broadcast %250 : vector<1x32xf32> to vector<16x32xf32>
    %364 = arith.addf %362, %363 : vector<16x32xf32>
    %cst_160 = arith.constant dense<0.000000e+00> : vector<16x128xf32>
    %365 = tpu.matmul %364, %3, %cst_160 {dimension_numbers = #tpu.dot_dimension_numbers<[1], [0], [0], [1], [0, 0, 1, 1], [], []>} : vector<16x32xf32>, vector<32x128xf32>, vector<16x128xf32> -> vector<16x128xf32>
    %366 = vector.broadcast %2 : vector<1x128xf32> to vector<16x128xf32>
    %367 = arith.addf %365, %366 : vector<16x128xf32>
    %368 = vector.shape_cast %367 : vector<16x128xf32> to vector<2x8x128xf32>
    %369 = vector.extract_strided_slice %368 {offsets = [0, 0, 0], sizes = [2, 1, 128], strides = [1, 1, 1]} : vector<2x8x128xf32> to vector<2x1x128xf32>
    %370 = vector.shape_cast %369 : vector<2x1x128xf32> to vector<2x128xf32>
    %c0_161 = arith.constant 0 : index
    %c0_162 = arith.constant 0 : index
    %371 = vector.load %arg4[%c0_161, %c0_162] : memref<2x128xf32, #tpu.memory_space<vmem>>, vector<2x128xf32>
    tpu.vector_store %arg4[%c0_161, %c0_162], %370 {strides = array<i32>} : memref<2x128xf32, #tpu.memory_space<vmem>>, vector<2x128xf32>,
    return
  }
}

</mosaic_0001>

<bundles_post_ra>
// kernel: _forward_no_loss.1
= control target key start
LH: loop header
LB: loop body
LE: loop exit
PB: predicated region body
PF: predicated region fallthrough
CT: control target
= control target key end

     0   :  { %vm27_vm0 = vcmask 261120   ;;  %s3563_s0 = inlined_call_operand.vmem [shape: f32[16,32], index: 0, kind: input, shape index: {}]   ;;  %s3564_s1 = inlined_call_operand.vmem [shape: f32[64,16], index: 1, kind: input, shape index: {}]   ;;  %s3565_s2 = inlined_call_operand.vmem [shape: f32[2,240,64], index: 2, kind: input, shape index: {}]   ;;  %s3566_s3 = inlined_call_operand.vmem [shape: f32[40,128], index: 3, kind: input, shape index: {}]   ;;  %s3567_s4 = inlined_call_operand.hbm [shape: f32[2,128], index: 4, kind: output, shape index: {}]  }
   0x1   :  { %v25_v0 = vld [vmem:[%s3563_s0] sm:$0xff]  ;;  %v26_v1 = vld [vmem:[%s3563_s0 + $0x8] sm:$0xff] }
   0x2   :  { %9 = vsyncpa [#allocation3], 0  ;;  %v28_v2 = vsel %vm27_vm0, %v25_v0, 0.0  ;;  %v37_v3 = vmul.f32 %v25_v0, %v25_v0  ;;  %v38_v4 = vmul.f32 %v26_v1, %v26_v1  ;;  %v31_v6 = vsel %vm27_vm0, %v26_v1, 0.0  ;;  %v101_v8 = vld [vmem:[%s3565_s2] sm:$0xff]  ;;  %v102_v9 = vld [vmem:[%s3565_s2 + $0x8] sm:$0xff] }
   0x3   :  { %29 = vadd.xlane.f32.xlu0 %v28_v2  ;;  %v105_v10 = vld [vmem:[%s3565_s2 + $0x20] sm:$0xff]  ;;  %v2714_v11 = vpack.c.bf16 %v102_v9, %v101_v8  ;;  %v106_v12 = vld [vmem:[%s3565_s2 + $0x28] sm:$0xff]  ;;  %v103_v13 = vld [vmem:[%s3565_s2 + $0x10] sm:$0xff]  ;;  %v79_v52 = vlaneseq  ;;  %v2972_v58 = vmov 0.0   ;;  %vm525_vm12 = vcmask 130048   ;;  %s2973_s7 = smov [#allocation2]  }
   0x4   :  { %v39_v5 = vsel %vm27_vm0, %v37_v3, 0.0  ;;  %v42_v7 = vsel %vm27_vm0, %v38_v4, 0.0  ;;  %v104_v14 = vld [vmem:[%s3565_s2 + $0x18] sm:$0xff]  ;;  %v2722_v15 = vpack.c.bf16 %v106_v12, %v105_v10  ;;  %v107_v17 = vld [vmem:[%s3565_s2 + $0x30] sm:$0xff]  ;;  %v109_v20 = vld [vmem:[%s3565_s2 + $0x40] sm:$0xff]  ;;  %vm993_vm13 = vcmask 523264  }
   0x5   :  { %40 = vadd.xlane.f32.xlu1 %v39_v5  ;;  %v2718_v16 = vpack.c.bf16 %v104_v14, %v103_v13  ;;  %2715 = vmatprep.subr.bf16.mxu0 %v2714_v11  ;;  %v108_v18 = vld [vmem:[%s3565_s2 + $0x38] sm:$0xff]  ;;  %v110_v21 = vld [vmem:[%s3565_s2 + $0x48] sm:$0xff]  ;;  %v2242_v39 = vld [vmem:[%s3566_s3] ss:$0 sm:$0xff]  ;;  %v3067_v53 = vand.u32 127, %v79_v52  ;;  %s2234_s8 = sshll.u32 %s2973_s7, 4  ;;  %s2235_s8 = int_to_ptr.vmem [resolvable:$true] %s2234_s8 }
   0x6   :  { %2717 = vmatpush3.bf16.msra.mxu0 %v2714_v11  ;;  %2723 = vmatprep.subr.bf16.mxu1 %v2722_v15  ;;  %v2726_v19 = vpack.c.bf16 %v108_v18, %v107_v17  ;;  %v2730_v22 = vpack.c.bf16 %v110_v21, %v109_v20  ;;  %v2243_v41 = vld [vmem:[%s3566_s3 + $0x1] ss:$0 sm:$0xff]  ;;  %v111_v47 = vld [vmem:[%s3565_s2 + $0x50] sm:$0xff]  ;;  %v112_v48 = vld [vmem:[%s3565_s2 + $0x58] sm:$0xff]  ;;  %vm2224_vm14 = vcmask 1041409   ;;  %p2953_p1 = scmp.lt.s32.totalorder %s2235_s8, %s2235_s8 }
   0x7   :  { %32 = vadd.xlane.f32.xlu0 %v31_v6  ;;  %2725 = vmatpush3.bf16.msra.mxu1 %v2722_v15  ;;  %v2734_v51 = vpack.c.bf16 %v112_v48, %v111_v47  ;;  %vm82_vm1 = vcmp.lt.s32.totalorder %v3067_v53, 8  ;;  %v2247_v54 = vld [vmem:[%s3565_s2 + $0xe1] ss:$0 sm:$0xff]  ;;  %v2244_v55 = vld [vmem:[%s3565_s2 + $0xe0] ss:$0 sm:$0xff]  ;;  %vm3083_vm2 = vmpackc.low %vm27_vm0, %vm27_vm0  ;;  %vm84_vm3 = vcmp.ge.s32.totalorder %v3067_v53, 8 }
   0x8   :  { %2719 = vmatprep.subr.bf16.mxu0 %v2718_v16  ;;  %2727 = vmatprep.subr.bf16.mxu1 %v2726_v19  ;;  %v3079_v59 = vsel %vm82_vm1, 0.35355338, %v2972_v58  ;;  %vm85_vm4 = vcmp.lt.s32.totalorder %v3067_v53, 16  ;;  %v2250_v4 = vld [vmem:[%s3565_s2 + $0xe2] ss:$0 sm:$0xff]  ;;  %vm87_vm6 = vcmp.ge.s32.totalorder %v3067_v53, 16 }
   0x9   :  { %43 = vadd.xlane.f32.xlu1 %v42_v7  ;;  %vm3098_vm5 = vmand %vm84_vm3, %vm85_vm4  ;;  %vm88_vm7 = vcmp.lt.s32.totalorder %v3067_v53, 24  ;;  %vm90_vm9 = vcmp.ge.s32.totalorder %v3067_v53, 24  ;;  %vm91_vm10 = vcmp.lt.s32.totalorder %v3067_v53, 32  ;;  %v3186_v47 = vld [vmem:[%s3564_s1 + $0x38] sm:$0xff]  ;;  %v2271_v17 = vld [vmem:[%s3565_s2 + $0xe3] ss:$0 sm:$0xff] }
   0xa   :  { %2721 = vmatpush3.bf16.msra.mxu0 %v2718_v16  ;;  %v3107_v11 = vsel %vm3098_vm5, 0.35355338, %v2972_v58  ;;  %vm3109_vm8 = vmand %vm87_vm6, %vm88_vm7 }
   0xb   :  { %2729 = vmatpush3.bf16.msra.mxu1 %v2726_v19  ;;  %2731 = vmatprep.subr.bf16.mxu0 %v2730_v22  ;;  %v3121_v16 = vsel %vm3109_vm8, 0.35355338, %v2972_v58  ;;  %vm3124_vm11 = vmand %vm90_vm9, %vm91_vm10  ;;  %v3244_v53 = vsel %vm3109_vm8, 1.0, %v2972_v58 }
   0xc   :  { %v3134_v20 = vsel %vm3124_vm11, 0.35355338, %v2972_v58 }
  0x90   :  { %v30_v23 = vpop.xlane.xlu0 %29 }
  0x91   :  { %v35_v24 = vmul.f32 0.03125, %v30_v23 }
  0x92   :  { %v41_v25 = vpop.xlane.xlu1 %40 }
  0x93   :  { %v47_v26 = vmul.f32 %v35_v24, %v35_v24  ;;  %v45_v27 = vmul.f32 0.03125, %v41_v25  ;;  %v51_v37 = vsub.f32 %v25_v0, %v35_v24  ;;  %v3146_v24 = vld [vmem:[%s3564_s1 + $0x8] sm:$0xff]  ;;  %v3151_v25 = vld [vmem:[%s3564_s1] sm:$0xff] }
  0x94   :  { %v33_v28 = vpop.xlane.xlu0 %32 }
  0x95   :  { %v49_v29 = vsub.f32 %v45_v27, %v47_v26  ;;  %v36_v30 = vmul.f32 0.03125, %v33_v28 }
  0x96   :  { %v44_v31 = vpop.xlane.xlu1 %43 }
  0x97   :  { %v53_v32 = vadd.f32 1e-05, %v49_v29  ;;  %v48_v33 = vmul.f32 %v36_v30, %v36_v30  ;;  %v46_v34 = vmul.f32 0.03125, %v44_v31  ;;  %v52_v42 = vsub.f32 %v26_v1, %v36_v30  ;;  %v3158_v30 = vld [vmem:[%s3564_s1 + $0x18] sm:$0xff] }
  0x99   :  { %2856 = vrsqrt.f32 %v53_v32  ;;  %v50_v35 = vsub.f32 %v46_v34, %v48_v33  ;;  %v3164_v32 = vld [vmem:[%s3564_s1 + $0x10] sm:$0xff] }
  0x9b   :  { %v54_v36 = vadd.f32 1e-05, %v50_v35 }
  0x9d   :  { %2858 = vrsqrt.f32 %v54_v36 }
  0xa3   :  { %v2857_v38 = vpop.eup %2856 }
  0xa4   :  { %v57_v40 = vmul.f32 %v2857_v38, %v51_v37  ;;  %v3172_v38 = vld [vmem:[%s3564_s1 + $0x28] sm:$0xff] }
  0xa6   :  { %v63_v43 = vmul.f32 %v2242_v39, %v57_v40  ;;  %v3178_v40 = vld [vmem:[%s3564_s1 + $0x20] sm:$0xff] }
  0xa7   :  { %v2859_v44 = vpop.eup %2858 }
  0xa8   :  { %v3045_v45 = vadd.f32 %v2243_v41, %v63_v43  ;;  %v58_v46 = vmul.f32 %v2859_v44, %v52_v42 }
  0xaa   :  { %2499 = vmatprep.mubr.msk.f32.mxu0 %vm27_vm0, %v3045_v45  ;;  %2510 = vmatprep.mubr.msk.f32.mxu1 %vm27_vm0, %v3045_v45  ;;  %v64_v49 = vmul.f32 %v2242_v39, %v58_v46 }
  0xac   :  { %v3057_v50 = vadd.f32 %v2243_v41, %v64_v49  ;;  %v3192_v49 = vld [vmem:[%s3564_s1 + $0x30] sm:$0xff] }
  0xae   :  { %2500 = vmatmul.mubr.msk.f32.vlgmr.msra.gmra.mrb[0].mxu0 %vm27_vm0, %v3057_v50  ;;  %2511 = vmatmul.mubr.msk.f32.vlgmr.msra.gmra.mrb[0].mxu1 %vm27_vm0, %v3057_v50 }
  0xaf   :  { %2733 = vmatpush3.bf16.msra.mxu0 %v2730_v22  ;;  %2521 = vmatprep.mubr.msk.f32.mxu0 %vm27_vm0, %v3045_v45 }
  0xb0   :  { %2735 = vmatprep.subr.bf16.mxu0 %v2734_v51 }
  0xb3   :  { %2737 = vmatpush3.bf16.msra.mxu0 %v2734_v51 }
  0xb6   :  { %2522 = vmatmul.mubr.msk.f32.vlgmr.msra.gmra.mrb[2].mxu0 %vm27_vm0, %v3057_v50 }
 0x181   :  { %v2501_v56 = vpop.f32.mrb[0].mxu0  ;;  %v2512_v57 = vpop.f32.mrb[0].mxu1 }
 0x182   :  { %v300_v60 = vadd.f32 %v2512_v57, %v2247_v54  ;;  %v215_v61 = vpop.f32.mrb[1].mxu0  ;;  %v294_v62 = vpop.f32.mrb[1].mxu1  ;;  %v221_v6 = vadd.f32 %v2501_v56, %v2244_v55 }
 0x183   :  { %v216_v63 = vadd.f32 %v2244_v55, %v215_v61  ;;  %v295_v0 = vadd.f32 %v2247_v54, %v294_v62 }
 0x184   :  { %v383_v13 = vmul.f32 %v221_v6, %v3079_v59  ;;  %v385_v18 = vmul.f32 %v221_v6, %v3107_v11  ;;  %v387_v21 = vmul.f32 %v221_v6, %v3121_v16  ;;  %v389_v23 = vmul.f32 %v221_v6, %v3134_v20 }
 0x185   :  { %v2738_v2 = vpack.c.bf16 %v300_v60, %v295_v0  ;;  %v382_v3 = vmul.f32 %v216_v63, %v3079_v59  ;;  %v384_v15 = vmul.f32 %v216_v63, %v3107_v11  ;;  %v386_v19 = vmul.f32 %v216_v63, %v3121_v16 }
 0x186   :  { %v388_v22 = vmul.f32 %v216_v63, %v3134_v20 }
 0x187   :  { %2740 = vmatprep.subr.msk.bf16.mxu1 %vm3083_vm2, %v2738_v2  ;;  %2528 = vmatprep.mubr.msk.f32.mxu1 %vm27_vm0, %v382_v3 }
 0x188   :  { %2743 = vmatpush3.bf16.xpose.msk.msra.mxu1 %vm3083_vm2, %v2738_v2 }
 0x189   :  { %v2523_v7 = vpop.f32.mrb[2].mxu0 }
 0x18a   :  { %v379_v8 = vadd.f32 %v2523_v7, %v2250_v4  ;;  %v373_v9 = vpop.f32.mrb[3].mxu0 }
 0x18b   :  { %v374_v10 = vadd.f32 %v2250_v4, %v373_v9 }
 0x18d   :  { %v2744_v14 = vpack.c.bf16 %v379_v8, %v374_v10 }
 0x18f   :  { %2745 = vmatprep.subr.bf16.mxu0 %v2744_v14  ;;  %2529 = vmatmul.mubr.msk.f32.vlgmr.msra.gmra.mrb[2].mxu1 %vm27_vm0, %v383_v13 }
 0x190   :  { %2747 = vmatpush3.bf16.msra.mxu0 %v2744_v14  ;;  %2531 = vmatprep.mubr.msk.f32.mxu1 %vm27_vm0, %v384_v15 }
 0x193   :  { %2532 = vmatmul.mubr.msk.f32.gmra.mrb[4].mxu1 %vm27_vm0, %v385_v18 }
 0x194   :  { %2534 = vmatprep.mubr.msk.f32.mxu1 %vm27_vm0, %v386_v19 }
 0x197   :  { %2535 = vmatmul.mubr.msk.f32.gmra.mrb[6].mxu1 %vm27_vm0, %v387_v21 }
 0x198   :  { %2537 = vmatprep.mubr.msk.f32.mxu1 %vm27_vm0, %v388_v22 }
 0x19b   :  { %2538 = vmatmul.mubr.msk.f32.gmra.mrb[8].mxu1 %vm27_vm0, %v389_v23 }
 0x262   :  { %v2530_v26 = vpop.f32.mrb[2].mxu1 }
 0x263   :  { %v492_v27 = vadd.f32 %v2530_v26, %v3146_v24  ;;  %v486_v28 = vpop.f32.mrb[3].mxu1 }
 0x264   :  { %v487_v29 = vadd.f32 %v486_v28, %v3151_v25 }
 0x265   :  { %v529_v31 = vsel %vm525_vm12, %v492_v27, -inf }
 0x266   :  { %530 = vmax.xlane.f32.xlu1 %v529_v31  ;;  %v2533_v33 = vpop.f32.mrb[4].mxu1  ;;  %v526_v34 = vsel %vm525_vm12, %v487_v29, -inf }
 0x267   :  { %v502_v35 = vadd.f32 %v2533_v33, %v3158_v30  ;;  %v496_v36 = vpop.f32.mrb[5].mxu1  ;;  %527 = vmax.xlane.f32.xlu0 %v526_v34 }
 0x268   :  { %v497_v37 = vadd.f32 %v496_v36, %v3164_v32 }
 0x269   :  { %v535_v39 = vsel %vm525_vm12, %v502_v35, -inf }
 0x26a   :  { %536 = vmax.xlane.f32.xlu1 %v535_v39  ;;  %v2536_v41 = vpop.f32.mrb[6].mxu1  ;;  %v532_v42 = vsel %vm525_vm12, %v497_v37, -inf }
 0x26b   :  { %v512_v43 = vadd.f32 %v2536_v41, %v3172_v38  ;;  %v506_v44 = vpop.f32.mrb[7].mxu1  ;;  %533 = vmax.xlane.f32.xlu0 %v532_v42 }
 0x26c   :  { %v507_v46 = vadd.f32 %v506_v44, %v3178_v40 }
 0x26d   :  { %v541_v48 = vsel %vm525_vm12, %v512_v43, -inf }
 0x26e   :  { %542 = vmax.xlane.f32.xlu1 %v541_v48  ;;  %v2539_v51 = vpop.f32.mrb[8].mxu1  ;;  %v538_v52 = vsel %vm525_vm12, %v507_v46, -inf }
 0x26f   :  { %v522_v54 = vadd.f32 %v2539_v51, %v3186_v47  ;;  %v516_v55 = vpop.f32.mrb[9].mxu1  ;;  %539 = vmax.xlane.f32.xlu0 %v538_v52 }
 0x270   :  { %v517_v56 = vadd.f32 %v516_v55, %v3192_v49 }
 0x271   :  { %v547_v57 = vsel %vm525_vm12, %v522_v54, -inf }
 0x272   :  { %548 = vmax.xlane.f32.xlu1 %v547_v57  ;;  %v544_v60 = vsel %vm525_vm12, %v517_v56, -inf }
 0x273   :  { %545 = vmax.xlane.f32.xlu0 %v544_v60 }
 0x2f3   :  { %v531_v61 = vpop.xlane.xlu1 %530 }
 0x2f4   :  { %v551_v62 = vsub.f32 %v492_v27, %v531_v61  ;;  %v528_v63 = vpop.xlane.xlu0 %527 }
 0x2f5   :  { %v550_v0 = vsub.f32 %v487_v29, %v528_v63 }
 0x2f6   :  { %v560_v2 = vmul.f32 1.442695, %v551_v62 }
 0x2f7   :  { %v558_v3 = vmul.f32 1.442695, %v550_v0  ;;  %v537_v4 = vpop.xlane.xlu1 %536 }
 0x2f8   :  { %2860 = vpow2.f32 %v560_v2  ;;  %v553_v6 = vsub.f32 %v502_v35, %v537_v4  ;;  %v534_v7 = vpop.xlane.xlu0 %533 }
 0x2f9   :  { %2862 = vpow2.f32 %v558_v3  ;;  %v552_v8 = vsub.f32 %v497_v37, %v534_v7 }
 0x2fa   :  { %v564_v9 = vmul.f32 1.442695, %v553_v6 }
 0x2fb   :  { %v562_v10 = vmul.f32 1.442695, %v552_v8  ;;  %v543_v13 = vpop.xlane.xlu1 %542 }
 0x2fc   :  { %2864 = vpow2.f32 %v564_v9  ;;  %v555_v14 = vsub.f32 %v512_v43, %v543_v13  ;;  %v540_v15 = vpop.xlane.xlu0 %539 }
 0x2fd   :  { %2866 = vpow2.f32 %v562_v10  ;;  %v554_v18 = vsub.f32 %v507_v46, %v540_v15 }
 0x2fe   :  { %v568_v19 = vmul.f32 1.442695, %v555_v14 }
 0x2ff   :  { %v566_v21 = vmul.f32 1.442695, %v554_v18  ;;  %v549_v22 = vpop.xlane.xlu1 %548 }
 0x300   :  { %2868 = vpow2.f32 %v568_v19  ;;  %v557_v23 = vsub.f32 %v522_v54, %v549_v22  ;;  %v546_v26 = vpop.xlane.xlu0 %545 }
 0x301   :  { %2870 = vpow2.f32 %v566_v21  ;;  %v556_v27 = vsub.f32 %v517_v56, %v546_v26  ;;  %v113_v26 = vld [vmem:[%s3565_s2 + $0x60] sm:$0xff] }
 0x302   :  { %v2861_v28 = vpop.eup %2860  ;;  %v572_v29 = vmul.f32 1.442695, %v557_v23 }
 0x303   :  { %v2863_v31 = vpop.eup %2862  ;;  %v570_v33 = vmul.f32 1.442695, %v556_v27  ;;  %v577_v34 = vsel %vm525_vm12, %v2861_v28, 0.0  ;;  %v114_v27 = vld [vmem:[%s3565_s2 + $0x68] sm:$0xff] }
 0x304   :  { %2872 = vpow2.f32 %v572_v29  ;;  %578 = vadd.xlane.f32.xlu1 %v577_v34  ;;  %v574_v35 = vsel %vm525_vm12, %v2863_v31, 0.0  ;;  %v115_v29 = vld [vmem:[%s3565_s2 + $0x70] sm:$0xff] }
 0x305   :  { %2874 = vpow2.f32 %v570_v33  ;;  %575 = vadd.xlane.f32.xlu0 %v574_v35 }
 0x306   :  { %v2865_v36 = vpop.eup %2864 }
 0x307   :  { %v2867_v37 = vpop.eup %2866  ;;  %v583_v39 = vsel %vm525_vm12, %v2865_v36, 0.0 }
 0x308   :  { %584 = vadd.xlane.f32.xlu1 %v583_v39  ;;  %v580_v41 = vsel %vm525_vm12, %v2867_v37, 0.0 }
 0x309   :  { %581 = vadd.xlane.f32.xlu0 %v580_v41 }
 0x30a   :  { %v2869_v42 = vpop.eup %2868 }
 0x30b   :  { %v2871_v43 = vpop.eup %2870  ;;  %v589_v44 = vsel %vm525_vm12, %v2869_v42, 0.0 }
 0x30c   :  { %590 = vadd.xlane.f32.xlu1 %v589_v44  ;;  %v586_v46 = vsel %vm525_vm12, %v2871_v43, 0.0 }
 0x30d   :  { %587 = vadd.xlane.f32.xlu0 %v586_v46 }
 0x30e   :  { %v2873_v48 = vpop.eup %2872 }
 0x30f   :  { %v2875_v51 = vpop.eup %2874  ;;  %v595_v52 = vsel %vm525_vm12, %v2873_v48, 0.0 }
 0x310   :  { %596 = vadd.xlane.f32.xlu1 %v595_v52  ;;  %v592_v54 = vsel %vm525_vm12, %v2875_v51, 0.0 }
 0x311   :  { %593 = vadd.xlane.f32.xlu0 %v592_v54 }
 0x391   :  { %v579_v55 = vpop.xlane.xlu1 %578 }
 0x392   :  { %2876 = vrcp.f32 %v579_v55  ;;  %v576_v56 = vpop.xlane.xlu0 %575 }
 0x393   :  { %2878 = vrcp.f32 %v576_v56  ;;  %v3251_v56 = vsel %vm3124_vm11, 1.0, %v2972_v58 }
 0x395   :  { %v585_v57 = vpop.xlane.xlu1 %584 }
 0x396   :  { %2880 = vrcp.f32 %v585_v57  ;;  %v582_v60 = vpop.xlane.xlu0 %581 }
 0x397   :  { %2882 = vrcp.f32 %v582_v60 }
 0x399   :  { %v591_v61 = vpop.xlane.xlu1 %590 }
 0x39a   :  { %2884 = vrcp.f32 %v591_v61  ;;  %v588_v62 = vpop.xlane.xlu0 %587 }
 0x39b   :  { %2886 = vrcp.f32 %v588_v62 }
 0x39c   :  { %v2877_v63 = vpop.eup %2876 }
 0x39d   :  { %v2879_v0 = vpop.eup %2878  ;;  %v597_v2 = vpop.xlane.xlu1 %596  ;;  %v607_v6 = vmul.f32 %v2877_v63, %v2861_v28  ;;  %v2748_v28 = vpack.c.bf16 %v114_v27, %v113_v26 }
 0x39e   :  { %2888 = vrcp.f32 %v597_v2  ;;  %v594_v3 = vpop.xlane.xlu0 %593  ;;  %v606_v4 = vmul.f32 %v2879_v0, %v2863_v31  ;;  %v116_v31 = vld [vmem:[%s3565_s2 + $0x78] sm:$0xff] }
 0x39f   :  { %2890 = vrcp.f32 %v594_v3  ;;  %2749 = vmatprep.subr.bf16.mxu1 %v2748_v28  ;;  %v2752_v33 = vpack.c.bf16 %v116_v31, %v115_v29 }
 0x3a0   :  { %v2881_v7 = vpop.eup %2880  ;;  %2544 = vmatprep.mubr.msk.f32.mxu0 %vm525_vm12, %v606_v4  ;;  %2751 = vmatpush3.bf16.msra.mxu1 %v2748_v28 }
 0x3a1   :  { %v2883_v8 = vpop.eup %2882  ;;  %2545 = vmatmul.mubr.msk.f32.vlgmr.msra.gmra.mrb[4].mxu0 %vm525_vm12, %v607_v6  ;;  %v609_v10 = vmul.f32 %v2881_v7, %v2865_v36  ;;  %2753 = vmatprep.subr.bf16.mxu1 %v2752_v33  ;;  %v3230_v36 = vsel %vm82_vm1, 1.0, %v2972_v58 }
 0x3a2   :  { %v608_v9 = vmul.f32 %v2883_v8, %v2867_v37  ;;  %v3235_v37 = vsel %vm3098_vm5, 1.0, %v2972_v58 }
 0x3a4   :  { %v2885_v13 = vpop.eup %2884  ;;  %2547 = vmatprep.mubr.msk.f32.mxu0 %vm525_vm12, %v608_v9  ;;  %2755 = vmatpush3.bf16.msra.mxu1 %v2752_v33 }
 0x3a5   :  { %v2887_v14 = vpop.eup %2886  ;;  %2548 = vmatmul.mubr.msk.f32.gmra.mrb[6].mxu0 %vm525_vm12, %v609_v10  ;;  %v611_v18 = vmul.f32 %v2885_v13, %v2869_v42 }
 0x3a6   :  { %v610_v15 = vmul.f32 %v2887_v14, %v2871_v43 }
 0x3a8   :  { %v2889_v19 = vpop.eup %2888  ;;  %2550 = vmatprep.mubr.msk.f32.mxu0 %vm525_vm12, %v610_v15 }
 0x3a9   :  { %v2891_v21 = vpop.eup %2890  ;;  %2551 = vmatmul.mubr.msk.f32.gmra.mrb[8].mxu0 %vm525_vm12, %v611_v18  ;;  %v613_v23 = vmul.f32 %v2889_v19, %v2873_v48  ;;  %v119_v19 = vld [vmem:[%s3565_s2 + $0x90] sm:$0xff] }
 0x3aa   :  { %v612_v22 = vmul.f32 %v2891_v21, %v2875_v51 }
 0x3ac   :  { %2553 = vmatprep.mubr.msk.f32.mxu0 %vm525_vm12, %v612_v22  ;;  %v120_v22 = vld [vmem:[%s3565_s2 + $0x98] sm:$0xff] }
 0x3ad   :  { %2554 = vmatmul.mubr.msk.f32.gmra.mrb[10].mxu0 %vm525_vm12, %v613_v23  ;;  %v2760_v23 = vpack.c.bf16 %v120_v22, %v119_v19 }
 0x474   :  { %v2546_v34 = vpop.f32.mrb[4].mxu0 }
 0x475   :  { %v704_v35 = vpop.f32.mrb[5].mxu0  ;;  %v744_v41 = vmul.f32 %v2546_v34, %v3230_v36 }
 0x476   :  { %v743_v44 = vmul.f32 %v704_v35, %v3230_v36 }
 0x478   :  { %v2549_v39 = vpop.f32.mrb[6].mxu0 }
 0x479   :  { %v746_v42 = vmul.f32 %v2549_v39, %v3235_v37  ;;  %v714_v43 = vpop.f32.mrb[7].mxu0 }
 0x47a   :  { %v745_v46 = vmul.f32 %v714_v43, %v3235_v37 }
 0x47b   :  { %v748_v48 = vadd.f32 %v746_v42, %v744_v41 }
 0x47c   :  { %v747_v51 = vadd.f32 %v745_v46, %v743_v44  ;;  %v2552_v5 = vpop.f32.mrb[8].mxu0 }
 0x47d   :  { %v750_v52 = vmul.f32 %v2552_v5, %v3244_v53  ;;  %v724_v54 = vpop.f32.mrb[9].mxu0 }
 0x47e   :  { %v749_v55 = vmul.f32 %v724_v54, %v3244_v53 }
 0x47f   :  { %v752_v57 = vadd.f32 %v750_v52, %v748_v48  ;;  %v2274_v52 = vld [vmem:[%s3565_s2 + $0xe4] ss:$0 sm:$0xff] }
 0x480   :  { %v751_v60 = vadd.f32 %v749_v55, %v747_v51  ;;  %v2555_v61 = vpop.f32.mrb[10].mxu0 }
 0x481   :  { %v754_v12 = vmul.f32 %v2555_v61, %v3251_v56  ;;  %v734_v62 = vpop.f32.mrb[11].mxu0 }
 0x482   :  { %v753_v63 = vmul.f32 %v734_v62, %v3251_v56 }
 0x483   :  { %v756_v0 = vadd.f32 %v754_v12, %v752_v57 }
 0x484   :  { %v755_v2 = vadd.f32 %v753_v63, %v751_v60  ;;  %v2275_v60 = vld [vmem:[%s3565_s2 + $0xe5] ss:$0 sm:$0xff] }
 0x486   :  { %2564 = vmatprep.mubr.msk.f32.mxu1 %vm27_vm0, %v755_v2  ;;  %v122_v2 = vld [vmem:[%s3565_s2 + $0xa8] sm:$0xff] }
 0x487   :  { %2565 = vmatmul.mubr.msk.f32.vlgmr.msra.gmra.mrb[10].mxu1 %vm27_vm0, %v756_v0  ;;  %v121_v0 = vld [vmem:[%s3565_s2 + $0xa0] sm:$0xff] }
 0x55a   :  { %v2566_v58 = vpop.f32.mrb[10].mxu1 }
 0x55b   :  { %v839_v3 = vadd.f32 %v2566_v58, %v2271_v17  ;;  %v833_v4 = vpop.f32.mrb[11].mxu1  ;;  %v123_v58 = vld [vmem:[%s3565_s2 + $0xb0] sm:$0xff] }
 0x55c   :  { %v834_v6 = vadd.f32 %v2271_v17, %v833_v4  ;;  %v2764_v17 = vpack.c.bf16 %v122_v2, %v121_v0 }
 0x55d   :  { %v843_v7 = vadd.f32 %v839_v3, %v3057_v50  ;;  %v117_v50 = vld [vmem:[%s3565_s2 + $0x80] sm:$0xff]  ;;  %v124_v3 = vld [vmem:[%s3565_s2 + $0xb8] sm:$0xff] }
 0x55e   :  { %v842_v8 = vadd.f32 %v834_v6, %v3045_v45  ;;  %v118_v45 = vld [vmem:[%s3565_s2 + $0x88] sm:$0xff]  ;;  %v2768_v4 = vpack.c.bf16 %v124_v3, %v123_v58  ;;  %v125_v6 = vld [vmem:[%s3565_s2 + $0xc0] sm:$0xff]  ;;  %2765 = vmatprep.subr.bf16.mxu1 %v2764_v17  ;;  %v2284_v58 = vld [vmem:[%s3565_s2 + $0xf0] sm:$0xff] }
 0x55f   :  { %v847_v9 = vsel %vm27_vm0, %v843_v7, 0.0  ;;  %v853_v10 = vmul.f32 %v843_v7, %v843_v7  ;;  %v2756_v21 = vpack.c.bf16 %v118_v45, %v117_v50  ;;  %2767 = vmatpush3.bf16.msra.mxu1 %v2764_v17 }
 0x560   :  { %848 = vadd.xlane.f32.xlu1 %v847_v9  ;;  %v844_v13 = vsel %vm27_vm0, %v842_v8, 0.0  ;;  %v852_v14 = vmul.f32 %v842_v8, %v842_v8  ;;  %2769 = vmatprep.subr.bf16.mxu1 %v2768_v4  ;;  %v127_v9 = vld [vmem:[%s3565_s2 + $0xd0] sm:$0xff] }
 0x561   :  { %845 = vadd.xlane.f32.xlu0 %v844_v13  ;;  %v857_v15 = vsel %vm27_vm0, %v853_v10, 0.0  ;;  %2757 = vmatprep.subr.bf16.mxu0 %v2756_v21  ;;  %v128_v10 = vld [vmem:[%s3565_s2 + $0xd8] sm:$0xff] }
 0x562   :  { %v854_v18 = vsel %vm27_vm0, %v852_v14, 0.0  ;;  %2759 = vmatpush3.bf16.msra.mxu0 %v2756_v21  ;;  %v2776_v13 = vpack.c.bf16 %v128_v10, %v127_v9  ;;  %v2276_v14 = vld [vmem:[%s3565_s2 + $0xe6] ss:$0 sm:$0xff] }
 0x563   :  { %2761 = vmatprep.subr.bf16.mxu0 %v2760_v23  ;;  %2771 = vmatpush3.bf16.msra.mxu1 %v2768_v4  ;;  %v2293_v4 = vld [vmem:[%s3565_s2 + $0x138] sm:$0xff]  ;;  %v2294_v10 = vld [vmem:[%s3565_s2 + $0x140] sm:$0xff] }
 0x564   :  { %858 = vadd.xlane.f32.xlu1 %v857_v15 }
 0x565   :  { %855 = vadd.xlane.f32.xlu0 %v854_v18 }
 0x566   :  { %2763 = vmatpush3.bf16.msra.mxu0 %v2760_v23 }
 0x5ed   :  { %v849_v26 = vpop.xlane.xlu1 %848 }
 0x5ee   :  { %v851_v27 = vmul.f32 0.03125, %v849_v26  ;;  %v846_v28 = vpop.xlane.xlu0 %845 }
 0x5ef   :  { %v850_v29 = vmul.f32 0.03125, %v846_v28 }
 0x5f0   :  { %v863_v33 = vmul.f32 %v851_v27, %v851_v27  ;;  %v867_v48 = vsub.f32 %v843_v7, %v851_v27  ;;  %v126_v7 = vld [vmem:[%s3565_s2 + $0xc8] sm:$0xff] }
 0x5f1   :  { %v859_v31 = vpop.xlane.xlu1 %858  ;;  %v862_v39 = vmul.f32 %v850_v29, %v850_v29  ;;  %v866_v5 = vsub.f32 %v842_v8, %v850_v29  ;;  %v2772_v8 = vpack.c.bf16 %v126_v7, %v125_v6  ;;  %v2286_v6 = vld [vmem:[%s3565_s2 + $0x100] sm:$0xff]  ;;  %v2287_v7 = vld [vmem:[%s3565_s2 + $0x108] sm:$0xff] }
 0x5f2   :  { %v861_v34 = vmul.f32 0.03125, %v859_v31  ;;  %v856_v35 = vpop.xlane.xlu0 %855  ;;  %v2784_v9 = vpack.c.bf16 %v2287_v7, %v2286_v6 }
 0x5f3   :  { %v860_v41 = vmul.f32 0.03125, %v856_v35  ;;  %2773 = vmatprep.subr.bf16.mxu1 %v2772_v8 }
 0x5f4   :  { %v865_v42 = vsub.f32 %v861_v34, %v863_v33  ;;  %2775 = vmatpush3.bf16.msra.mxu1 %v2772_v8 }
 0x5f5   :  { %v864_v43 = vsub.f32 %v860_v41, %v862_v39  ;;  %2777 = vmatprep.subr.bf16.mxu1 %v2776_v13 }
 0x5f6   :  { %v869_v44 = vadd.f32 1e-05, %v865_v42 }
 0x5f7   :  { %v868_v46 = vadd.f32 1e-05, %v864_v43 }
 0x5f8   :  { %2892 = vrsqrt.f32 %v869_v44  ;;  %2779 = vmatpush3.bf16.msra.mxu1 %v2776_v13  ;;  %v2295_v13 = vld [vmem:[%s3565_s2 + $0x148] sm:$0xff] }
 0x5f9   :  { %2894 = vrsqrt.f32 %v868_v46 }
 0x602   :  { %v2893_v51 = vpop.eup %2892 }
 0x603   :  { %v2895_v54 = vpop.eup %2894  ;;  %v873_v55 = vmul.f32 %v2893_v51, %v867_v48  ;;  %v2279_v48 = vld [vmem:[%s3565_s2 + $0xe7] ss:$0 sm:$0xff] }
 0x604   :  { %v872_v57 = vmul.f32 %v2895_v54, %v866_v5 }
 0x605   :  { %v879_v61 = vmul.f32 %v2274_v52, %v873_v55 }
 0x606   :  { %v878_v12 = vmul.f32 %v2274_v52, %v872_v57 }
 0x607   :  { %v885_v63 = vadd.f32 %v2275_v60, %v879_v61 }
 0x608   :  { %v884_v62 = vadd.f32 %v2275_v60, %v878_v12 }
 0x60a   :  { %2575 = vmatprep.mubr.msk.f32.mxu0 %vm27_vm0, %v884_v62 }
 0x60b   :  { %2576 = vmatmul.mubr.msk.f32.vlgmr.msra.gmra.mrb[12].mxu0 %vm27_vm0, %v885_v63 }
 0x6de   :  { %v2577_v15 = vpop.f32.mrb[12].mxu0 }
 0x6df   :  { %v968_v18 = vadd.f32 %v2577_v15, %v2276_v14  ;;  %v962_v50 = vpop.f32.mrb[13].mxu0  ;;  %v2288_v15 = vld [vmem:[%s3565_s2 + $0x110] sm:$0xff] }
 0x6e0   :  { %v963_v45 = vadd.f32 %v2276_v14, %v962_v50  ;;  %v2800_v14 = vpack.c.bf16 %v2295_v13, %v2294_v10 }
 0x6e1   :  { %v974_v19 = vmul.f32 0.044715, %v968_v18  ;;  %v972_v43 = vmul.f32 0.5, %v968_v18 }
 0x6e2   :  { %v973_v21 = vmul.f32 0.044715, %v963_v45  ;;  %v971_v41 = vmul.f32 0.5, %v963_v45 }
 0x6e3   :  { %v976_v22 = vmul.f32 %v974_v19, %v968_v18 }
 0x6e4   :  { %v975_v23 = vmul.f32 %v973_v21, %v963_v45 }
 0x6e5   :  { %v978_v26 = vmul.f32 %v976_v22, %v968_v18 }
 0x6e6   :  { %v977_v27 = vmul.f32 %v975_v23, %v963_v45 }
 0x6e7   :  { %v980_v28 = vadd.f32 %v978_v26, %v968_v18  ;;  %v2289_v18 = vld [vmem:[%s3565_s2 + $0x118] sm:$0xff] }
 0x6e8   :  { %v979_v29 = vadd.f32 %v977_v27, %v963_v45  ;;  %v2788_v50 = vpack.c.bf16 %v2289_v18, %v2288_v15 }
 0x6e9   :  { %v982_v31 = vmul.f32 0.7978846, %v980_v28 }
 0x6ea   :  { %v981_v33 = vmul.f32 0.7978846, %v979_v29 }
 0x6eb   :  { %2896 = vtanh.f32 %v982_v31 }
 0x6ec   :  { %2898 = vtanh.f32 %v981_v33 }
 0x6f5   :  { %v2897_v34 = vpop.eup %2896 }
 0x6f6   :  { %v2899_v35 = vpop.eup %2898  ;;  %v986_v39 = vadd.f32 1.0, %v2897_v34 }
 0x6f7   :  { %v985_v42 = vadd.f32 1.0, %v2899_v35 }
 0x6f8   :  { %v988_v46 = vmul.f32 %v986_v39, %v972_v43 }
 0x6f9   :  { %v987_v44 = vmul.f32 %v985_v42, %v971_v41 }
 0x6fb   :  { %2594 = vmatprep.mubr.msk.f32.mxu1 %vm993_vm13, %v987_v44  ;;  %v2282_v44 = vld [vmem:[%s3565_s2 + $0xe8] ss:$0 sm:$0xff] }
 0x6fc   :  { %2595 = vmatmul.mubr.msk.f32.vlgmr.msra.gmra.mrb[12].mxu1 %vm993_vm13, %v988_v46 }
 0x7cf   :  { %v2596_v51 = vpop.f32.mrb[12].mxu1 }
 0x7d0   :  { %v1072_v5 = vadd.f32 %v2596_v51, %v2279_v48  ;;  %v1066_v52 = vpop.f32.mrb[13].mxu1 }
 0x7d1   :  { %v1067_v54 = vadd.f32 %v2279_v48, %v1066_v52 }
 0x7d2   :  { %v1076_v55 = vadd.f32 %v1072_v5, %v885_v63  ;;  %v2292_v63 = vld [vmem:[%s3565_s2 + $0x130] sm:$0xff]  ;;  %v2283_v5 = vld [vmem:[%s3565_s2 + $0xe9] ss:$0 sm:$0xff] }
 0x7d3   :  { %v1075_v57 = vadd.f32 %v1067_v54, %v884_v62  ;;  %v2285_v62 = vld [vmem:[%s3565_s2 + $0xf8] sm:$0xff]  ;;  %v2796_v8 = vpack.c.bf16 %v2293_v4, %v2292_v63 }
 0x7d4   :  { %v1080_v60 = vsel %vm27_vm0, %v1076_v55, 0.0  ;;  %v1086_v61 = vmul.f32 %v1076_v55, %v1076_v55  ;;  %v2780_v3 = vpack.c.bf16 %v2285_v62, %v2284_v58 }
 0x7d5   :  { %1081 = vadd.xlane.f32.xlu1 %v1080_v60  ;;  %v1077_v12 = vsel %vm27_vm0, %v1075_v57, 0.0  ;;  %v1085_v0 = vmul.f32 %v1075_v57, %v1075_v57  ;;  %2797 = vmatprep.subr.bf16.mxu1 %v2796_v8  ;;  %v2290_v60 = vld [vmem:[%s3565_s2 + $0x120] sm:$0xff] }
 0x7d6   :  { %1078 = vadd.xlane.f32.xlu0 %v1077_v12  ;;  %v1090_v2 = vsel %vm27_vm0, %v1086_v61, 0.0  ;;  %2781 = vmatprep.subr.bf16.mxu0 %v2780_v3 }
 0x7d7   :  { %v1087_v17 = vsel %vm27_vm0, %v1085_v0, 0.0  ;;  %2783 = vmatpush3.bf16.msra.mxu0 %v2780_v3  ;;  %2799 = vmatpush3.bf16.msra.mxu1 %v2796_v8  ;;  %v2328_v0 = vld [vmem:[%s3565_s2 + $0x1d2] ss:$0 sm:$0xff] }
 0x7d8   :  { %2785 = vmatprep.subr.bf16.mxu0 %v2784_v9  ;;  %2801 = vmatprep.subr.bf16.mxu1 %v2800_v14 }
 0x7d9   :  { %1091 = vadd.xlane.f32.xlu1 %v1090_v2  ;;  %v2322_v2 = vld [vmem:[%s3565_s2 + $0x1d0] ss:$0 sm:$0xff] }
 0x7da   :  { %1088 = vadd.xlane.f32.xlu0 %v1087_v17 }
 0x7db   :  { %2787 = vmatpush3.bf16.msra.mxu0 %v2784_v9  ;;  %2803 = vmatpush3.bf16.msra.mxu1 %v2800_v14  ;;  %v2325_v9 = vld [vmem:[%s3565_s2 + $0x1d1] ss:$0 sm:$0xff] }
 0x7dc   :  { %2789 = vmatprep.subr.bf16.mxu0 %v2788_v50 }
 0x862   :  { %v1082_v45 = vpop.xlane.xlu1 %1081 }
 0x863   :  { %v1084_v19 = vmul.f32 0.03125, %v1082_v45  ;;  %v1079_v21 = vpop.xlane.xlu0 %1078 }
 0x864   :  { %v1083_v22 = vmul.f32 0.03125, %v1079_v21 }
 0x865   :  { %v1096_v26 = vmul.f32 %v1084_v19, %v1084_v19  ;;  %v1100_v41 = vsub.f32 %v1076_v55, %v1084_v19  ;;  %v2291_v55 = vld [vmem:[%s3565_s2 + $0x128] sm:$0xff] }
 0x866   :  { %v1092_v23 = vpop.xlane.xlu1 %1091  ;;  %v1095_v29 = vmul.f32 %v1083_v22, %v1083_v22  ;;  %v1099_v43 = vsub.f32 %v1075_v57, %v1083_v22  ;;  %v2792_v12 = vpack.c.bf16 %v2291_v55, %v2290_v60 }
 0x867   :  { %v1094_v27 = vmul.f32 0.03125, %v1092_v23  ;;  %v1089_v28 = vpop.xlane.xlu0 %1088 }
 0x868   :  { %v1093_v31 = vmul.f32 0.03125, %v1089_v28 }
 0x869   :  { %v1098_v33 = vsub.f32 %v1094_v27, %v1096_v26 }
 0x86a   :  { %v1097_v34 = vsub.f32 %v1093_v31, %v1095_v29 }
 0x86b   :  { %v1102_v35 = vadd.f32 1e-05, %v1098_v33 }
 0x86c   :  { %v1101_v39 = vadd.f32 1e-05, %v1097_v34 }
 0x86d   :  { %2900 = vrsqrt.f32 %v1102_v35 }
 0x86e   :  { %2902 = vrsqrt.f32 %v1101_v39 }
 0x877   :  { %v2901_v42 = vpop.eup %2900 }
 0x878   :  { %v2903_v46 = vpop.eup %2902  ;;  %v1106_v48 = vmul.f32 %v2901_v42, %v1100_v41 }
 0x879   :  { %v1105_v51 = vmul.f32 %v2903_v46, %v1099_v43 }
 0x87a   :  { %v1112_v52 = vmul.f32 %v2282_v44, %v1106_v48 }
 0x87b   :  { %v1111_v54 = vmul.f32 %v2282_v44, %v1105_v51 }
 0x87c   :  { %v3366_v61 = vadd.f32 %v2283_v5, %v1112_v52 }
 0x87d   :  { %v3364_v57 = vadd.f32 %v2283_v5, %v1111_v54 }
 0x87f   :  { %2605 = vmatprep.mubr.msk.f32.mxu0 %vm27_vm0, %v3364_v57  ;;  %2627 = vmatprep.mubr.msk.f32.mxu1 %vm27_vm0, %v3364_v57 }
 0x880   :  { %2606 = vmatmul.mubr.msk.f32.vlgmr.msra.gmra.mrb[14].mxu0 %vm27_vm0, %v3366_v61  ;;  %2628 = vmatmul.mubr.msk.f32.vlgmr.msra.gmra.mrb[14].mxu1 %vm27_vm0, %v3366_v61 }
 0x881   :  { %2791 = vmatpush3.bf16.msra.mxu0 %v2788_v50  ;;  %2616 = vmatprep.mubr.msk.f32.mxu0 %vm27_vm0, %v3364_v57 }
 0x882   :  { %2793 = vmatprep.subr.bf16.mxu0 %v2792_v12 }
 0x885   :  { %2795 = vmatpush3.bf16.msra.mxu0 %v2792_v12 }
 0x888   :  { %2617 = vmatmul.mubr.msk.f32.vlgmr.msra.gmra.mrb[16].mxu0 %vm27_vm0, %v3366_v61 }
 0x953   :  { %v2607_v17 = vpop.f32.mrb[14].mxu0  ;;  %v2629_v58 = vpop.f32.mrb[14].mxu1 }
 0x954   :  { %v1398_v62 = vadd.f32 %v2629_v58, %v2328_v0  ;;  %v1234_v63 = vpop.f32.mrb[15].mxu0  ;;  %v1392_v3 = vpop.f32.mrb[15].mxu1  ;;  %v1240_v50 = vadd.f32 %v2607_v17, %v2322_v2 }
 0x955   :  { %v1235_v4 = vadd.f32 %v2322_v2, %v1234_v63  ;;  %v1393_v6 = vadd.f32 %v2328_v0, %v1392_v3 }
 0x956   :  { %v1402_v45 = vmul.f32 %v1240_v50, %v3079_v59  ;;  %v1404_v21 = vmul.f32 %v1240_v50, %v3107_v11  ;;  %v1406_v1 = vmul.f32 %v1240_v50, %v3121_v16 }
 0x957   :  { %v2810_v7 = vpack.c.bf16 %v1398_v62, %v1393_v6  ;;  %v1401_v8 = vmul.f32 %v1235_v4, %v3079_v59  ;;  %v1403_v19 = vmul.f32 %v1235_v4, %v3107_v11  ;;  %v1405_v22 = vmul.f32 %v1235_v4, %v3121_v16 }
 0x958   :  { %v1407_v23 = vmul.f32 %v1235_v4, %v3134_v20  ;;  %v1408_v59 = vmul.f32 %v1240_v50, %v3134_v20 }
 0x959   :  { %2634 = vmatprep.mubr.msk.f32.mxu0 %vm27_vm0, %v1401_v8  ;;  %2811 = vmatprep.subr.bf16.mxu1 %v2810_v7 }
 0x95a   :  { %2813 = vmatpush3.bf16.msra.mxu1 %v2810_v7 }
 0x95b   :  { %v2618_v10 = vpop.f32.mrb[16].mxu0 }
 0x95c   :  { %v1319_v13 = vadd.f32 %v2618_v10, %v2325_v9  ;;  %v1313_v14 = vpop.f32.mrb[17].mxu0 }
 0x95d   :  { %v1314_v15 = vadd.f32 %v2325_v9, %v1313_v14 }
 0x95f   :  { %v2804_v18 = vpack.c.bf16 %v1319_v13, %v1314_v15 }
 0x961   :  { %2806 = vmatprep.subr.msk.bf16.mxu0 %vm3083_vm2, %v2804_v18 }
 0x962   :  { %2809 = vmatpush3.bf16.xpose.msk.msra.mxu0 %vm3083_vm2, %v2804_v18 }
 0x969   :  { %2635 = vmatmul.mubr.msk.f32.vlgmr.msra.gmra.mrb[18].mxu0 %vm27_vm0, %v1402_v45 }
 0x96a   :  { %2637 = vmatprep.mubr.msk.f32.mxu0 %vm27_vm0, %v1403_v19 }
 0x96d   :  { %2638 = vmatmul.mubr.msk.f32.gmra.mrb[20].mxu0 %vm27_vm0, %v1404_v21 }
 0x96e   :  { %2640 = vmatprep.mubr.msk.f32.mxu0 %vm27_vm0, %v1405_v22 }
 0x971   :  { %2641 = vmatmul.mubr.msk.f32.gmra.mrb[22].mxu0 %vm27_vm0, %v1406_v1 }
 0x972   :  { %2643 = vmatprep.mubr.msk.f32.mxu0 %vm27_vm0, %v1407_v23 }
 0x975   :  { %2644 = vmatmul.mubr.msk.f32.gmra.mrb[24].mxu0 %vm27_vm0, %v1408_v59 }
 0xa3c   :  { %v2636_v26 = vpop.f32.mrb[18].mxu0 }
 0xa3d   :  { %v1511_v11 = vadd.f32 %v2636_v26, %v3146_v24  ;;  %v1505_v27 = vpop.f32.mrb[19].mxu0 }
 0xa3e   :  { %v1506_v28 = vadd.f32 %v1505_v27, %v3151_v25 }
 0xa3f   :  { %v1547_v29 = vsel %vm525_vm12, %v1511_v11, -inf }
 0xa40   :  { %1548 = vmax.xlane.f32.xlu1 %v1547_v29  ;;  %v2639_v16 = vpop.f32.mrb[20].mxu0  ;;  %v1544_v31 = vsel %vm525_vm12, %v1506_v28, -inf }
 0xa41   :  { %v1521_v33 = vadd.f32 %v2639_v16, %v3158_v30  ;;  %v1515_v34 = vpop.f32.mrb[21].mxu0  ;;  %1545 = vmax.xlane.f32.xlu0 %v1544_v31 }
 0xa42   :  { %v1516_v20 = vadd.f32 %v1515_v34, %v3164_v32 }
 0xa43   :  { %v1553_v35 = vsel %vm525_vm12, %v1521_v33, -inf }
 0xa44   :  { %1554 = vmax.xlane.f32.xlu1 %v1553_v35  ;;  %v2642_v39 = vpop.f32.mrb[22].mxu0  ;;  %v1550_v24 = vsel %vm525_vm12, %v1516_v20, -inf }
 0xa45   :  { %v1531_v25 = vadd.f32 %v2642_v39, %v3172_v38  ;;  %v1525_v41 = vpop.f32.mrb[23].mxu0  ;;  %1551 = vmax.xlane.f32.xlu0 %v1550_v24 }
 0xa46   :  { %v1526_v42 = vadd.f32 %v1525_v41, %v3178_v40 }
 0xa47   :  { %v1559_v43 = vsel %vm525_vm12, %v1531_v25, -inf }
 0xa48   :  { %1560 = vmax.xlane.f32.xlu1 %v1559_v43  ;;  %v2645_v30 = vpop.f32.mrb[24].mxu0  ;;  %v1556_v44 = vsel %vm525_vm12, %v1526_v42, -inf }
 0xa49   :  { %v1541_v32 = vadd.f32 %v2645_v30, %v3186_v47  ;;  %v1535_v46 = vpop.f32.mrb[25].mxu0  ;;  %1557 = vmax.xlane.f32.xlu0 %v1556_v44 }
 0xa4a   :  { %v1536_v48 = vadd.f32 %v1535_v46, %v3192_v49 }
 0xa4b   :  { %v1565_v51 = vsel %vm525_vm12, %v1541_v32, -inf }
 0xa4c   :  { %1566 = vmax.xlane.f32.xlu1 %v1565_v51  ;;  %v1562_v38 = vsel %vm525_vm12, %v1536_v48, -inf }
 0xa4d   :  { %1563 = vmax.xlane.f32.xlu0 %v1562_v38 }
 0xacd   :  { %v1549_v5 = vpop.xlane.xlu1 %1548 }
 0xace   :  { %v1569_v40 = vsub.f32 %v1511_v11, %v1549_v5  ;;  %v1546_v52 = vpop.xlane.xlu0 %1545 }
 0xacf   :  { %v1568_v54 = vsub.f32 %v1506_v28, %v1546_v52 }
 0xad0   :  { %v1578_v60 = vmul.f32 1.442695, %v1569_v40 }
 0xad1   :  { %v1576_v55 = vmul.f32 1.442695, %v1568_v54  ;;  %v1555_v12 = vpop.xlane.xlu1 %1554 }
 0xad2   :  { %2904 = vpow2.f32 %v1578_v60  ;;  %v1571_v0 = vsub.f32 %v1521_v33, %v1555_v12  ;;  %v1552_v47 = vpop.xlane.xlu0 %1551  ;;  %v2296_v12 = vld [vmem:[%s3565_s2 + $0x150] sm:$0xff] }
 0xad3   :  { %2906 = vpow2.f32 %v1576_v55  ;;  %v1570_v2 = vsub.f32 %v1516_v20, %v1552_v47 }
 0xad4   :  { %v1582_v17 = vmul.f32 1.442695, %v1571_v0  ;;  %v2297_v0 = vld [vmem:[%s3565_s2 + $0x158] sm:$0xff] }
 0xad5   :  { %v1580_v49 = vmul.f32 1.442695, %v1570_v2  ;;  %v1561_v58 = vpop.xlane.xlu1 %1560  ;;  %v2814_v47 = vpack.c.bf16 %v2297_v0, %v2296_v12  ;;  %v2298_v2 = vld [vmem:[%s3565_s2 + $0x160] sm:$0xff]  ;;  %v2352_v12 = vld [vmem:[%s3565_s2 + $0x1d4] ss:$0 sm:$0xff] }
 0xad6   :  { %2908 = vpow2.f32 %v1582_v17  ;;  %v1573_v62 = vsub.f32 %v1531_v25, %v1561_v58  ;;  %v1558_v63 = vpop.xlane.xlu0 %1557  ;;  %v2299_v17 = vld [vmem:[%s3565_s2 + $0x168] sm:$0xff] }
 0xad7   :  { %2910 = vpow2.f32 %v1580_v49  ;;  %v1572_v3 = vsub.f32 %v1526_v42, %v1558_v63  ;;  %2815 = vmatprep.subr.bf16.mxu0 %v2814_v47  ;;  %v2818_v49 = vpack.c.bf16 %v2299_v17, %v2298_v2  ;;  %v2353_v17 = vld [vmem:[%s3565_s2 + $0x1d5] ss:$0 sm:$0xff] }
 0xad8   :  { %v1586_v4 = vmul.f32 1.442695, %v1573_v62  ;;  %2817 = vmatpush3.bf16.msra.mxu0 %v2814_v47 }
 0xad9   :  { %v1584_v6 = vmul.f32 1.442695, %v1572_v3  ;;  %v1567_v7 = vpop.xlane.xlu1 %1566  ;;  %2819 = vmatprep.subr.bf16.mxu0 %v2818_v49 }
 0xada   :  { %2912 = vpow2.f32 %v1586_v4  ;;  %v1575_v8 = vsub.f32 %v1541_v32, %v1567_v7  ;;  %v1564_v9 = vpop.xlane.xlu0 %1563 }
 0xadb   :  { %2914 = vpow2.f32 %v1584_v6  ;;  %v1574_v10 = vsub.f32 %v1536_v48, %v1564_v9 }
 0xadc   :  { %v2905_v13 = vpop.eup %2904  ;;  %v1590_v14 = vmul.f32 1.442695, %v1575_v8  ;;  %2821 = vmatpush3.bf16.msra.mxu0 %v2818_v49 }
 0xadd   :  { %v2907_v15 = vpop.eup %2906  ;;  %v1588_v18 = vmul.f32 1.442695, %v1574_v10  ;;  %v1595_v50 = vsel %vm525_vm12, %v2905_v13, 0.0 }
 0xade   :  { %2916 = vpow2.f32 %v1590_v14  ;;  %1596 = vadd.xlane.f32.xlu1 %v1595_v50  ;;  %v1592_v45 = vsel %vm525_vm12, %v2907_v15, 0.0 }
 0xadf   :  { %2918 = vpow2.f32 %v1588_v18  ;;  %1593 = vadd.xlane.f32.xlu0 %v1592_v45 }
 0xae0   :  { %v2909_v19 = vpop.eup %2908 }
 0xae1   :  { %v2911_v21 = vpop.eup %2910  ;;  %v1601_v22 = vsel %vm525_vm12, %v2909_v19, 0.0 }
 0xae2   :  { %1602 = vadd.xlane.f32.xlu1 %v1601_v22  ;;  %v1598_v1 = vsel %vm525_vm12, %v2911_v21, 0.0 }
 0xae3   :  { %1599 = vadd.xlane.f32.xlu0 %v1598_v1 }
 0xae4   :  { %v2913_v23 = vpop.eup %2912 }
 0xae5   :  { %v2915_v59 = vpop.eup %2914  ;;  %v1607_v26 = vsel %vm525_vm12, %v2913_v23, 0.0 }
 0xae6   :  { %1608 = vadd.xlane.f32.xlu1 %v1607_v26  ;;  %v1604_v11 = vsel %vm525_vm12, %v2915_v59, 0.0 }
 0xae7   :  { %1605 = vadd.xlane.f32.xlu0 %v1604_v11 }
 0xae8   :  { %v2917_v27 = vpop.eup %2916 }
 0xae9   :  { %v2919_v28 = vpop.eup %2918  ;;  %v1613_v29 = vsel %vm525_vm12, %v2917_v27, 0.0 }
 0xaea   :  { %1614 = vadd.xlane.f32.xlu1 %v1613_v29  ;;  %v1610_v16 = vsel %vm525_vm12, %v2919_v28, 0.0 }
 0xaeb   :  { %1611 = vadd.xlane.f32.xlu0 %v1610_v16 }
 0xb6b   :  { %v1597_v31 = vpop.xlane.xlu1 %1596 }
 0xb6c   :  { %2920 = vrcp.f32 %v1597_v31  ;;  %v1594_v33 = vpop.xlane.xlu0 %1593 }
 0xb6d   :  { %2922 = vrcp.f32 %v1594_v33 }
 0xb6f   :  { %v1603_v34 = vpop.xlane.xlu1 %1602 }
 0xb70   :  { %2924 = vrcp.f32 %v1603_v34  ;;  %v1600_v20 = vpop.xlane.xlu0 %1599 }
 0xb71   :  { %2926 = vrcp.f32 %v1600_v20  ;;  %v2302_v20 = vld [vmem:[%s3565_s2 + $0x180] sm:$0xff] }
 0xb73   :  { %v1609_v35 = vpop.xlane.xlu1 %1608 }
 0xb74   :  { %2928 = vrcp.f32 %v1609_v35  ;;  %v1606_v39 = vpop.xlane.xlu0 %1605 }
 0xb75   :  { %2930 = vrcp.f32 %v1606_v39  ;;  %v2303_v39 = vld [vmem:[%s3565_s2 + $0x188] sm:$0xff] }
 0xb76   :  { %v2921_v24 = vpop.eup %2920 }
 0xb77   :  { %v2923_v25 = vpop.eup %2922  ;;  %v1615_v41 = vpop.xlane.xlu1 %1614  ;;  %v1625_v30 = vmul.f32 %v2921_v24, %v2905_v13  ;;  %v2826_v24 = vpack.c.bf16 %v2303_v39, %v2302_v20 }
 0xb78   :  { %2932 = vrcp.f32 %v1615_v41  ;;  %v1612_v42 = vpop.xlane.xlu0 %1611  ;;  %v1624_v43 = vmul.f32 %v2923_v25, %v2907_v15 }
 0xb79   :  { %2934 = vrcp.f32 %v1612_v42 }
 0xb7a   :  { %v2925_v44 = vpop.eup %2924  ;;  %2650 = vmatprep.mubr.msk.f32.mxu1 %vm525_vm12, %v1624_v43 }
 0xb7b   :  { %v2927_v32 = vpop.eup %2926  ;;  %2651 = vmatmul.mubr.msk.f32.vlgmr.msra.gmra.mrb[16].mxu1 %vm525_vm12, %v1625_v30  ;;  %v1627_v48 = vmul.f32 %v2925_v44, %v2909_v19 }
 0xb7c   :  { %v1626_v46 = vmul.f32 %v2927_v32, %v2911_v21 }
 0xb7e   :  { %v2929_v51 = vpop.eup %2928  ;;  %2653 = vmatprep.mubr.msk.f32.mxu1 %vm525_vm12, %v1626_v46 }
 0xb7f   :  { %v2931_v38 = vpop.eup %2930  ;;  %2654 = vmatmul.mubr.msk.f32.gmra.mrb[18].mxu1 %vm525_vm12, %v1627_v48  ;;  %v1629_v40 = vmul.f32 %v2929_v51, %v2913_v23 }
 0xb80   :  { %v1628_v5 = vmul.f32 %v2931_v38, %v2915_v59 }
 0xb82   :  { %v2933_v52 = vpop.eup %2932  ;;  %2656 = vmatprep.mubr.msk.f32.mxu1 %vm525_vm12, %v1628_v5 }
 0xb83   :  { %v2935_v54 = vpop.eup %2934  ;;  %2657 = vmatmul.mubr.msk.f32.gmra.mrb[20].mxu1 %vm525_vm12, %v1629_v40  ;;  %v1631_v55 = vmul.f32 %v2933_v52, %v2917_v27 }
 0xb84   :  { %v1630_v60 = vmul.f32 %v2935_v54, %v2919_v28 }
 0xb86   :  { %2659 = vmatprep.mubr.msk.f32.mxu1 %vm525_vm12, %v1630_v60 }
 0xb87   :  { %2660 = vmatmul.mubr.msk.f32.gmra.mrb[22].mxu1 %vm525_vm12, %v1631_v55 }
 0xc4e   :  { %v2652_v58 = vpop.f32.mrb[16].mxu1 }
 0xc4f   :  { %v1722_v62 = vpop.f32.mrb[17].mxu1  ;;  %v1762_v3 = vmul.f32 %v2652_v58, %v3230_v36 }
 0xc50   :  { %v1761_v7 = vmul.f32 %v1722_v62, %v3230_v36 }
 0xc52   :  { %v2655_v63 = vpop.f32.mrb[18].mxu1 }
 0xc53   :  { %v1764_v4 = vmul.f32 %v2655_v63, %v3235_v37  ;;  %v1732_v6 = vpop.f32.mrb[19].mxu1 }
 0xc54   :  { %v1763_v8 = vmul.f32 %v1732_v6, %v3235_v37  ;;  %v2349_v37 = vld [vmem:[%s3565_s2 + $0x1d3] ss:$0 sm:$0xff] }
 0xc55   :  { %v1766_v9 = vadd.f32 %v1764_v4, %v1762_v3  ;;  %v2304_v3 = vld [vmem:[%s3565_s2 + $0x190] sm:$0xff]  ;;  %v2305_v4 = vld [vmem:[%s3565_s2 + $0x198] sm:$0xff] }
 0xc56   :  { %v1765_v10 = vadd.f32 %v1763_v8, %v1761_v7  ;;  %v2658_v13 = vpop.f32.mrb[20].mxu1  ;;  %v2830_v6 = vpack.c.bf16 %v2305_v4, %v2304_v3  ;;  %v2306_v7 = vld [vmem:[%s3565_s2 + $0x1a0] sm:$0xff]  ;;  %v2307_v8 = vld [vmem:[%s3565_s2 + $0x1a8] sm:$0xff] }
 0xc57   :  { %v1768_v14 = vmul.f32 %v2658_v13, %v3244_v53  ;;  %v1742_v15 = vpop.f32.mrb[21].mxu1  ;;  %v2309_v13 = vld [vmem:[%s3565_s2 + $0x1b8] sm:$0xff] }
 0xc58   :  { %v1767_v18 = vmul.f32 %v1742_v15, %v3244_v53  ;;  %2831 = vmatprep.subr.bf16.mxu0 %v2830_v6  ;;  %v2310_v15 = vld [vmem:[%s3565_s2 + $0x1c0] sm:$0xff] }
 0xc59   :  { %v1770_v50 = vadd.f32 %v1768_v14, %v1766_v9  ;;  %v2308_v9 = vld [vmem:[%s3565_s2 + $0x1b0] sm:$0xff] }
 0xc5a   :  { %v1769_v45 = vadd.f32 %v1767_v18, %v1765_v10  ;;  %v2661_v19 = vpop.f32.mrb[22].mxu1  ;;  %v2834_v10 = vpack.c.bf16 %v2307_v8, %v2306_v7  ;;  %v2838_v14 = vpack.c.bf16 %v2309_v13, %v2308_v9  ;;  %v2311_v18 = vld [vmem:[%s3565_s2 + $0x1c8] sm:$0xff]  ;;  %v2360_v13 = vld [vmem:[%s3565_s2 + $0x1d8] ss:$0 sm:$0xff] }
 0xc5b   :  { %v1772_v21 = vmul.f32 %v2661_v19, %v3251_v56  ;;  %v1752_v22 = vpop.f32.mrb[23].mxu1 }
 0xc5c   :  { %v1771_v1 = vmul.f32 %v1752_v22, %v3251_v56 }
 0xc5d   :  { %v1774_v23 = vadd.f32 %v1772_v21, %v1770_v50  ;;  %v2842_v50 = vpack.c.bf16 %v2311_v18, %v2310_v15 }
 0xc5e   :  { %v1773_v36 = vadd.f32 %v1771_v1, %v1769_v45  ;;  %v2354_v45 = vld [vmem:[%s3565_s2 + $0x1d6] ss:$0 sm:$0xff] }
 0xc60   :  { %2670 = vmatprep.mubr.msk.f32.mxu0 %vm27_vm0, %v1773_v36 }
 0xc61   :  { %2671 = vmatmul.mubr.msk.f32.vlgmr.msra.gmra.mrb[26].mxu0 %vm27_vm0, %v1774_v23 }
 0xc62   :  { %2833 = vmatpush3.bf16.msra.mxu0 %v2830_v6 }
 0xc63   :  { %2835 = vmatprep.subr.bf16.mxu0 %v2834_v10 }
 0xc66   :  { %2837 = vmatpush3.bf16.msra.mxu0 %v2834_v10 }
 0xc67   :  { %2839 = vmatprep.subr.bf16.mxu0 %v2838_v14 }
 0xc6a   :  { %2841 = vmatpush3.bf16.msra.mxu0 %v2838_v14 }
 0xc6b   :  { %2843 = vmatprep.subr.bf16.mxu0 %v2842_v50 }
 0xc6e   :  { %2845 = vmatpush3.bf16.msra.mxu0 %v2842_v50  ;;  %v2361_v50 = vld [vmem:[%s3565_s2 + $0x1d9] ss:$0 sm:$0xff] }
 0xd34   :  { %v2672_v59 = vpop.f32.mrb[26].mxu0 }
 0xd35   :  { %v1857_v53 = vadd.f32 %v2672_v59, %v2349_v37  ;;  %v1851_v26 = vpop.f32.mrb[27].mxu0 }
 0xd36   :  { %v1852_v11 = vadd.f32 %v2349_v37, %v1851_v26 }
 0xd37   :  { %v1861_v27 = vadd.f32 %v1857_v53, %v3366_v61  ;;  %v2300_v61 = vld [vmem:[%s3565_s2 + $0x170] sm:$0xff] }
 0xd38   :  { %v1860_v28 = vadd.f32 %v1852_v11, %v3364_v57  ;;  %v2301_v57 = vld [vmem:[%s3565_s2 + $0x178] sm:$0xff] }
 0xd39   :  { %v1865_v56 = vsel %vm27_vm0, %v1861_v27, 0.0  ;;  %v1871_v29 = vmul.f32 %v1861_v27, %v1861_v27  ;;  %v2822_v35 = vpack.c.bf16 %v2301_v57, %v2300_v61 }
 0xd3a   :  { %1866 = vadd.xlane.f32.xlu1 %v1865_v56  ;;  %v1862_v16 = vsel %vm27_vm0, %v1860_v28, 0.0  ;;  %v1870_v31 = vmul.f32 %v1860_v28, %v1860_v28 }
 0xd3b   :  { %1863 = vadd.xlane.f32.xlu0 %v1862_v16  ;;  %v1875_v33 = vsel %vm27_vm0, %v1871_v29, 0.0  ;;  %2823 = vmatprep.subr.bf16.mxu1 %v2822_v35 }
 0xd3c   :  { %v1872_v34 = vsel %vm27_vm0, %v1870_v31, 0.0  ;;  %2825 = vmatpush3.bf16.msra.mxu1 %v2822_v35  ;;  %v2357_v35 = vld [vmem:[%s3565_s2 + $0x1d7] ss:$0 sm:$0xff]  ;;  %s2948_s2 = scalar_lea.vmem %s2235_s8, 32 }
 0xd3d   :  { %2827 = vmatprep.subr.bf16.mxu1 %v2826_v24  ;;  %p2949_p0 = scmp.ne.s32.totalorder %s2235_s8, %s2948_s2  ;;  %p2954_p2 = scmp.lt.s32.totalorder %s2948_s2, %s2948_s2 }
 0xd3e   :  { %1876 = vadd.xlane.f32.xlu1 %v1875_v33 }
 0xd3f   :  { %1873 = vadd.xlane.f32.xlu0 %v1872_v34  ;;  %p2955_p3 = por %p2954_p2, %p2953_p1 }
 0xd40   :  { %2829 = vmatpush3.bf16.msra.mxu1 %v2826_v24 }
 0xd41   :  { %p2956_p4 = pnand %p2955_p3, %p2949_p0 }
 0xdc7   :  { %v1867_v25 = vpop.xlane.xlu1 %1866 }
 0xdc8   :  { %v1869_v41 = vmul.f32 0.03125, %v1867_v25  ;;  %v1864_v42 = vpop.xlane.xlu0 %1863 }
 0xdc9   :  { %v1868_v43 = vmul.f32 0.03125, %v1864_v42 }
 0xdca   :  { %v1881_v44 = vmul.f32 %v1869_v41, %v1869_v41  ;;  %v1885_v54 = vsub.f32 %v1861_v27, %v1869_v41 }
 0xdcb   :  { %v1877_v30 = vpop.xlane.xlu1 %1876  ;;  %v1880_v48 = vmul.f32 %v1868_v43, %v1868_v43  ;;  %v1884_v55 = vsub.f32 %v1860_v28, %v1868_v43 }
 0xdcc   :  { %v1879_v32 = vmul.f32 0.03125, %v1877_v30  ;;  %v1874_v46 = vpop.xlane.xlu0 %1873 }
 0xdcd   :  { %v1878_v51 = vmul.f32 0.03125, %v1874_v46 }
 0xdce   :  { %v1883_v38 = vsub.f32 %v1879_v32, %v1881_v44 }
 0xdcf   :  { %v1882_v5 = vsub.f32 %v1878_v51, %v1880_v48 }
 0xdd0   :  { %v1887_v40 = vadd.f32 1e-05, %v1883_v38  ;;  %v21_v38 = vld [vmem:[%s3566_s3 + $0x8] sm:$0xff] }
 0xdd1   :  { %v1886_v52 = vadd.f32 1e-05, %v1882_v5  ;;  %v22_v5 = vld [vmem:[%s3566_s3 + $0x10] sm:$0xff] }
 0xdd2   :  { %2936 = vrsqrt.f32 %v1887_v40  ;;  %v23_v40 = vld [vmem:[%s3566_s3 + $0x18] sm:$0xff] }
 0xdd3   :  { %2938 = vrsqrt.f32 %v1886_v52  ;;  %v2846_v52 = vpack.c.bf16 %v22_v5, %v21_v38 }
 0xdd5   :  { %2847 = vmatprep.subr.bf16.mxu1 %v2846_v52 }
 0xddc   :  { %v2937_v60 = vpop.eup %2936 }
 0xddd   :  { %v2939_v0 = vpop.eup %2938  ;;  %v1891_v47 = vmul.f32 %v2937_v60, %v1885_v54  ;;  %v24_v54 = vld [vmem:[%s3566_s3 + $0x20] sm:$0xff] }
 0xdde   :  { %v1890_v2 = vmul.f32 %v2939_v0, %v1884_v55  ;;  %v2850_v60 = vpack.c.bf16 %v24_v54, %v23_v40 }
 0xddf   :  { %v1897_v49 = vmul.f32 %v2352_v12, %v1891_v47 }
 0xde0   :  { %v1896_v58 = vmul.f32 %v2352_v12, %v1890_v2 }
 0xde1   :  { %v1903_v63 = vadd.f32 %v2353_v17, %v1897_v49 }
 0xde2   :  { %v1902_v62 = vadd.f32 %v2353_v17, %v1896_v58 }
 0xde4   :  { %2681 = vmatprep.mubr.msk.f32.mxu1 %vm27_vm0, %v1902_v62 }
 0xde5   :  { %2682 = vmatmul.mubr.msk.f32.vlgmr.msra.gmra.mrb[24].mxu1 %vm27_vm0, %v1903_v63 }
 0xde6   :  { %2849 = vmatpush3.bf16.msra.mxu1 %v2846_v52 }
 0xde7   :  { %2851 = vmatprep.subr.bf16.mxu1 %v2850_v60 }
 0xdea   :  { %2853 = vmatpush3.bf16.msra.mxu1 %v2850_v60 }
 0xeb8   :  { %v2683_v19 = vpop.f32.mrb[24].mxu1 }
 0xeb9   :  { %v1986_v21 = vadd.f32 %v2683_v19, %v2354_v45  ;;  %v1980_v22 = vpop.f32.mrb[25].mxu1 }
 0xeba   :  { %v1981_v1 = vadd.f32 %v2354_v45, %v1980_v22 }
 0xebb   :  { %v1992_v23 = vmul.f32 0.044715, %v1986_v21  ;;  %v1990_v61 = vmul.f32 0.5, %v1986_v21 }
 0xebc   :  { %v1991_v36 = vmul.f32 0.044715, %v1981_v1  ;;  %v1989_v33 = vmul.f32 0.5, %v1981_v1 }
 0xebd   :  { %v1994_v37 = vmul.f32 %v1992_v23, %v1986_v21 }
 0xebe   :  { %v1993_v59 = vmul.f32 %v1991_v36, %v1981_v1 }
 0xebf   :  { %v1996_v53 = vmul.f32 %v1994_v37, %v1986_v21 }
 0xec0   :  { %v1995_v26 = vmul.f32 %v1993_v59, %v1981_v1 }
 0xec1   :  { %v1998_v11 = vadd.f32 %v1996_v53, %v1986_v21 }
 0xec2   :  { %v1997_v27 = vadd.f32 %v1995_v26, %v1981_v1  ;;  %v2362_v1 = vld [vmem:[%s3566_s3 + $0x2] ss:$0 sm:$0xff] }
 0xec3   :  { %v2000_v28 = vmul.f32 0.7978846, %v1998_v11 }
 0xec4   :  { %v1999_v56 = vmul.f32 0.7978846, %v1997_v27 }
 0xec5   :  { %2940 = vtanh.f32 %v2000_v28 }
 0xec6   :  { %2942 = vtanh.f32 %v1999_v56 }
 0xecf   :  { %v2941_v29 = vpop.eup %2940 }
 0xed0   :  { %v2943_v16 = vpop.eup %2942  ;;  %v2004_v31 = vadd.f32 1.0, %v2941_v29 }
 0xed1   :  { %v2003_v34 = vadd.f32 1.0, %v2943_v16 }
 0xed2   :  { %v2006_v20 = vmul.f32 %v2004_v31, %v1990_v61 }
 0xed3   :  { %v2005_v57 = vmul.f32 %v2003_v34, %v1989_v33 }
 0xed5   :  { %2700 = vmatprep.mubr.msk.f32.mxu0 %vm993_vm13, %v2005_v57 }
 0xed6   :  { %2701 = vmatmul.mubr.msk.f32.vlgmr.msra.gmra.mrb[28].mxu0 %vm993_vm13, %v2006_v20 }
 0xfa9   :  { %v2702_v39 = vpop.f32.mrb[28].mxu0 }
 0xfaa   :  { %v2089_v24 = vadd.f32 %v2702_v39, %v2357_v35  ;;  %v2083_v25 = vpop.f32.mrb[29].mxu0 }
 0xfab   :  { %v2084_v41 = vadd.f32 %v2357_v35, %v2083_v25 }
 0xfac   :  { %v2093_v42 = vadd.f32 %v2089_v24, %v1903_v63 }
 0xfad   :  { %v2092_v43 = vadd.f32 %v2084_v41, %v1902_v62 }
 0xfae   :  { %v2097_v30 = vsel %vm27_vm0, %v2093_v42, 0.0  ;;  %v2103_v44 = vmul.f32 %v2093_v42, %v2093_v42 }
 0xfaf   :  { %2098 = vadd.xlane.f32.xlu1 %v2097_v30  ;;  %v2094_v32 = vsel %vm27_vm0, %v2092_v43, 0.0  ;;  %v2102_v46 = vmul.f32 %v2092_v43, %v2092_v43 }
 0xfb0   :  { %2095 = vadd.xlane.f32.xlu0 %v2094_v32  ;;  %v2107_v48 = vsel %vm27_vm0, %v2103_v44, 0.0 }
 0xfb1   :  { %v2104_v51 = vsel %vm27_vm0, %v2102_v46, 0.0 }
 0xfb3   :  { %2108 = vadd.xlane.f32.xlu1 %v2107_v48 }
 0xfb4   :  { %2105 = vadd.xlane.f32.xlu0 %v2104_v51 }
0x103c   :  { %v2099_v55 = vpop.xlane.xlu1 %2098 }
0x103d   :  { %v2101_v12 = vmul.f32 0.03125, %v2099_v55  ;;  %v2096_v0 = vpop.xlane.xlu0 %2095 }
0x103e   :  { %v2100_v47 = vmul.f32 0.03125, %v2096_v0 }
0x103f   :  { %v2113_v17 = vmul.f32 %v2101_v12, %v2101_v12  ;;  %v2117_v8 = vsub.f32 %v2093_v42, %v2101_v12 }
0x1040   :  { %v2109_v2 = vpop.xlane.xlu1 %2108  ;;  %v2112_v62 = vmul.f32 %v2100_v47, %v2100_v47  ;;  %v2116_v10 = vsub.f32 %v2092_v43, %v2100_v47 }
0x1041   :  { %v2111_v49 = vmul.f32 0.03125, %v2109_v2  ;;  %v2106_v58 = vpop.xlane.xlu0 %2105 }
0x1042   :  { %v2110_v63 = vmul.f32 0.03125, %v2106_v58 }
0x1043   :  { %v2115_v3 = vsub.f32 %v2111_v49, %v2113_v17 }
0x1044   :  { %v2114_v4 = vsub.f32 %v2110_v63, %v2112_v62 }
0x1045   :  { %v2119_v6 = vadd.f32 1e-05, %v2115_v3 }
0x1046   :  { %v2118_v7 = vadd.f32 1e-05, %v2114_v4 }
0x1047   :  { %2944 = vrsqrt.f32 %v2119_v6 }
0x1048   :  { %2946 = vrsqrt.f32 %v2118_v7 }
0x1051   :  { %v2945_v9 = vpop.eup %2944 }
0x1052   :  { %v2947_v14 = vpop.eup %2946  ;;  %v2123_v15 = vmul.f32 %v2945_v9, %v2117_v8 }
0x1053   :  { %v2122_v18 = vmul.f32 %v2947_v14, %v2116_v10 }
0x1054   :  { %v2129_v45 = vmul.f32 %v2360_v13, %v2123_v15 }
0x1055   :  { %v2128_v19 = vmul.f32 %v2360_v13, %v2122_v18 }
0x1056   :  { %v2135_v22 = vadd.f32 %v2361_v50, %v2129_v45 }
0x1057   :  { %v2134_v21 = vadd.f32 %v2361_v50, %v2128_v19 }
0x1059   :  { %2711 = vmatprep.mubr.msk.f32.mxu1 %vm27_vm0, %v2134_v21 }
0x105a   :  { %2712 = vmatmul.mubr.msk.f32.vlgmr.msra.gmra.mrb[26].mxu1 %vm27_vm0, %v2135_v22 }
0x112d   :  { %v2713_v23 = vpop.f32.mrb[26].mxu1 }
0x112e   :  { %v2218_v36 = vadd.f32 %v2713_v23, %v2362_v1  ;;  %v2212_v37 = vpop.f32.mrb[27].mxu1 }
0x112f   :  { %v2213_v59 = vadd.f32 %v2362_v1, %v2212_v37 }
0x1130   :  { %v2223_v53 = vrot.slane %v2218_v36, 7 }
0x1132   :  { %v2225_v26 = vsel %vm2224_vm14, %v2223_v53, %v2213_v59 }
0x1133   :  { %2227 = vst [vmem:[#allocation2] sm:$0x3] %v2225_v26 }
0x1134   :  { %2959 = shalt.err (!%p2956_p4)
}
0x1135   :  { %s2960_s10 = scalar_lea.hbm %s3567_s4, 32 }
0x1136   :  { %p2961_p5 = scmp.ne.s32.totalorder %s3567_s4, %s2960_s10  ;;  %p2964_p6 = scmp.lt.u32.totalorder %s2960_s10, %s3567_s4 }
0x1138   :  { %p2966_p7 = pnand %p2964_p6, %p2961_p5 }
0x113a   :  { %2969 = shalt.err (!%p2966_p7)
}
0x113b   :  { %2237 = dma.vmem_to_hbm [thread:$0]  %s2235_s8, 32, %s3567_s4, [#allocation3]  }
0x113c   :  { %2970 = dma.done.wait [#allocation3], 32  }
0x113d   :  { %2971 = vsyncadd [#allocation3], 4294967264 }
0x113e   :  { %2241 = vsyncpa [#allocation3], 1 }

</bundles_post_ra>
